<compile_context>
chip_gen: v6e
topology: v6e:2x2x1
jax: 0.10.0
libtpu: 0.0.40
codegen_flags: <defaults>
</compile_context>

<pallas_src>
import numpy as np
import jax
import jax.numpy as jnp
from jax import lax
from jax.experimental import pallas as pl
from jax.experimental.pallas import tpu as pltpu

BN_EPS = 1e-5
LEAKY_SLOPE = 0.2


# ----------------------------- kernel helpers -------------------------------

def _leaky(v, slope=LEAKY_SLOPE):
    return jnp.where(v > 0, v, slope * v)


def _conv_same(x, w_ref, b_ref, op_ref, *, nb, h, n_in, kh):
    """'Same'-padded conv along H expressed as ONE MXU matmul.

    x      : (h*nb, n_in) activation value, rows in (h, b)-major order.
    w_ref  : (kh*n_in, n_out) stacked banded conv weights (BN folded in).
    b_ref  : (1, n_out) bias row.
    op_ref : VMEM scratch with >= (h+kh-1)*nb rows and >= kh*n_in cols.
    """
    r = kh // 2
    m = h * nb
    pb = r * nb
    # Zero the operand window once, then drop the full x at shifted row
    # offsets: column block `a` of the window becomes the (row-shift = a - r)
    # tap, with the vertical boundary rows staying zero.
    op_ref[pb:pb + m, 0:kh * n_in] = jnp.zeros((m, kh * n_in), jnp.float32)
    for a in range(kh):
        off = pb - (a - r) * nb
        op_ref[off:off + m, a * n_in:(a + 1) * n_in] = x
    op = op_ref[pb:pb + m, 0:kh * n_in]
    y = jnp.dot(op, w_ref[...], preferred_element_type=jnp.float32)
    return y + b_ref[...]


def _build_kernel(plan):
    """Build the fully fused decoder kernel for a fixed (small) plan."""
    nb = plan["B"]
    cc0 = plan["cc0"]

    def kernel(*refs):
        it = iter(refs)
        z_ref, wfc_ref, bfc_ref = next(it), next(it), next(it)
        blk_refs = []
        for blk in plan["blocks"]:
            d = dict(w1=next(it), b1=next(it), w2=next(it), b2=next(it),
                     mexp=next(it) if blk["has_expand"] else None)
            if blk["upsample"]:
                d["rdup"], d["ddup"] = next(it), next(it)
            blk_refs.append(d)
        wp_ref, bp_ref = next(it), next(it)
        out_ref = next(it)
        op_ref, fc_ref, asm_ref = next(it), next(it), next(it)

        # ---- fc + ReLU, then re-layout (B, 4*4*cc0) -> (4*B, 4*cc0) --------
        y = jnp.dot(z_ref[...], wfc_ref[...], preferred_element_type=jnp.float32)
        fc_ref[...] = jnp.maximum(y + bfc_ref[...], 0.0)
        n0 = 4 * cc0
        for i in range(4):                       # rows become (h, b)-major
            asm_ref[i * nb:(i + 1) * nb, :] = fc_ref[0:nb, i * n0:(i + 1) * n0]
        x = asm_ref[...]                         # (4*B, 4*cc0)

        # ---- residual blocks (+ fused nearest 2x upsample) -----------------
        for blk, d in zip(plan["blocks"], blk_refs):
            h_sz, w_sz = blk["H"], blk["W"]
            cin, cmid = blk["cin"], blk["cmid"]
            if d["mexp"] is not None:
                identity = jnp.dot(x, d["mexp"][...],
                                   preferred_element_type=jnp.float32)
            else:
                identity = x
            h1 = _leaky(_conv_same(x, d["w1"], d["b1"], op_ref,
                                   nb=nb, h=h_sz, n_in=w_sz * cin, kh=3))
            y2 = _conv_same(h1, d["w2"], d["b2"], op_ref,
                            nb=nb, h=h_sz, n_in=w_sz * cmid, kh=3)
            x = _leaky(y2 + identity)
            if blk["upsample"]:
                # nearest 2x: duplicate rows (left matmul), then lanes (right).
                xr = jnp.dot(d["rdup"][...], x,
                             preferred_element_type=jnp.float32)
                x = jnp.dot(xr, d["ddup"][...],
                            preferred_element_type=jnp.float32)

        # ---- 5x5 predict conv ----------------------------------------------
        out_ref[...] = _conv_same(x, wp_ref, bp_ref, op_ref,
                                  nb=nb, h=plan["S"],
                                  n_in=plan["S"] * plan["c_last"], kh=5)

    return kernel


# --------------------------- pallas_call wrapper -----------------------------

def decoder_res_forward(z, pp):
    """Fused Pallas forward of Decoder_Res.  z: (B, hdim).  Returns NCHW."""
    plan = pp["plan"]
    nb, S, cdim = plan["B"], plan["S"], plan["cdim"]
    assert z.shape[0] == nb

    inputs = [z, pp["wfc"], pp["bfc"]]
    for blk_w, blk_p in zip(pp["blocks"], plan["blocks"]):
        inputs += [blk_w["w1"], blk_w["b1"], blk_w["w2"], blk_w["b2"]]
        if blk_p["has_expand"]:
            inputs.append(blk_w["mexp"])
        if blk_p["upsample"]:
            inputs += [blk_w["rdup"], blk_w["ddup"]]
    inputs += [pp["wp"], pp["bp"]]

    vmem = pl.BlockSpec(memory_space=pltpu.MemorySpace.VMEM)
    out2d = pl.pallas_call(
        _build_kernel(plan),
        out_shape=jax.ShapeDtypeStruct((S * nb, S * cdim), jnp.float32),
        in_specs=[vmem] * len(inputs),
        out_specs=vmem,
        scratch_shapes=[
            pltpu.VMEM((plan["op_rows"], plan["op_cols"]), jnp.float32),
            pltpu.VMEM((nb, 16 * plan["cc0"]), jnp.float32),
            pltpu.VMEM((4 * nb, 4 * plan["cc0"]), jnp.float32),
        ],
    )(*inputs)
    # rows are (h, b)-major, lanes are (w, c)-major  ->  NCHW
    return out2d.reshape(S, nb, S, cdim).transpose(1, 3, 0, 2)


# -------------------------- parameters (synthetic) ---------------------------

def init_params(key, hdim, channels, cdim):
    """PyTorch-layout synthetic parameters for Decoder_Res (eval-mode BN)."""
    cc0 = channels[-1]
    keys = iter(jax.random.split(key, 256))

    def nrm(shape, scale=0.1):
        return scale * jax.random.normal(next(keys), shape, jnp.float32)

    def bn_params(c):
        return dict(gamma=1.0 + nrm((c,)), beta=nrm((c,)), mean=nrm((c,)),
                    var=jax.random.uniform(next(keys), (c,), jnp.float32, 0.5, 1.5))

    params = {"hdim": hdim, "channels": list(channels), "cdim": cdim,
              "wfc": nrm((hdim, cc0 * 16)), "bfc": nrm((cc0 * 16,)),
              "blocks": []}

    blocks_cfg, cc = [], cc0
    for ch in channels[::-1]:
        blocks_cfg.append((cc, ch, True))
        cc = ch
    blocks_cfg.append((cc, cc, False))

    for inc, outc, ups in blocks_cfg:
        midc = outc                                   # scale = 1.0
        params["blocks"].append(dict(
            inc=inc, outc=outc, upsample=ups,
            w1=nrm((midc, inc, 3, 3)), bn1=bn_params(midc),
            w2=nrm((outc, midc, 3, 3)), bn2=bn_params(outc),
            wexp=(nrm((outc, inc, 1, 1)) if inc != outc else None)))

    params["wp"] = nrm((cdim, cc, 5, 5))
    params["bp"] = nrm((cdim,))
    return params


def _banded_conv_mats(k_hwio, W):
    """(KH, KW, Cin, Cout) conv kernel -> (KH, W*Cin, W*Cout) banded mats."""
    KH, KW, cin, cout = k_hwio.shape
    r = KW // 2
    m = np.zeros((KH, W * cin, W * cout), np.float32)
    for a in range(KH):
        for kb in range(KW):
            dx = kb - r
            for j in range(W):                        # output pixel
                jp = j + dx                           # input pixel
                if 0 <= jp < W:
                    m[a, jp * cin:(jp + 1) * cin,
                      j * cout:(j + 1) * cout] = k_hwio[a, kb]
    return m


def _block_diag(k_io, W):
    cin, cout = k_io.shape
    m = np.zeros((W * cin, W * cout), np.float32)
    for j in range(W):
        m[j * cin:(j + 1) * cin, j * cout:(j + 1) * cout] = k_io
    return m


def _fold_bn(w_oihw, bn):
    g = np.asarray(bn["gamma"], np.float32)
    bta = np.asarray(bn["beta"], np.float32)
    mu = np.asarray(bn["mean"], np.float32)
    var = np.asarray(bn["var"], np.float32)
    s = g / np.sqrt(var + BN_EPS)
    t = bta - mu * s
    k = np.transpose(np.asarray(w_oihw, np.float32), (2, 3, 1, 0)) * s  # HWIO
    return k, t


def prepare_pallas_params(params, batch):
    """Repack PyTorch-layout params into the fused kernel's layout."""
    channels, cdim = params["channels"], params["cdim"]
    cc0 = channels[-1]
    nb = batch

    # fc columns: PyTorch view(B, cc, 4, 4) order (c, i, j) -> (i, j, c)
    new = np.arange(cc0 * 16)
    old = (new % cc0) * 16 + new // cc0
    wfc = np.asarray(params["wfc"], np.float32)[:, old]
    bfc = np.asarray(params["bfc"], np.float32)[old].reshape(1, -1)

    pp = {"wfc": jnp.asarray(wfc), "bfc": jnp.asarray(bfc), "blocks": []}
    blocks_plan = []
    op_rows, op_cols = 0, 0
    sz = 4
    for blk in params["blocks"]:
        inc, outc, ups = blk["inc"], blk["outc"], blk["upsample"]
        midc = outc
        W = sz
        k1, t1 = _fold_bn(blk["w1"], blk["bn1"])
        k2, t2 = _fold_bn(blk["w2"], blk["bn2"])
        pblk = dict(
            w1=jnp.asarray(_banded_conv_mats(k1, W).reshape(3 * W * inc, W * midc)),
            b1=jnp.asarray(np.tile(t1, W).reshape(1, W * midc)),
            w2=jnp.asarray(_banded_conv_mats(k2, W).reshape(3 * W * midc, W * outc)),
            b2=jnp.asarray(np.tile(t2, W).reshape(1, W * outc)),
            mexp=None, rdup=None, ddup=None)
        if blk["wexp"] is not None:
            kexp = np.transpose(np.asarray(blk["wexp"], np.float32),
                                (2, 3, 1, 0))[0, 0]
            pblk["mexp"] = jnp.asarray(_block_diag(kexp, W))
        if ups:
            rdup = np.zeros((2 * W * nb, W * nb), np.float32)
            for h in range(W):
                for k in range(2):
                    for b in range(nb):
                        rdup[(2 * h + k) * nb + b, h * nb + b] = 1.0
            ddup = np.zeros((W * outc, 2 * W * outc), np.float32)
            eye = np.eye(outc, dtype=np.float32)
            for w in range(W):
                for k in range(2):
                    ddup[w * outc:(w + 1) * outc,
                         (2 * w + k) * outc:(2 * w + k + 1) * outc] = eye
            pblk["rdup"], pblk["ddup"] = jnp.asarray(rdup), jnp.asarray(ddup)
        pp["blocks"].append(pblk)
        blocks_plan.append(dict(H=W, W=W, cin=inc, cmid=midc, cout=outc,
                                has_expand=blk["wexp"] is not None,
                                upsample=ups))
        op_rows = max(op_rows, (W + 2) * nb)
        op_cols = max(op_cols, 3 * W * inc, 3 * W * midc)
        if ups:
            sz *= 2

    S = sz
    c_last = params["blocks"][-1]["outc"]
    kp5 = np.transpose(np.asarray(params["wp"], np.float32), (2, 3, 1, 0))
    pp["wp"] = jnp.asarray(_banded_conv_mats(kp5, S).reshape(5 * S * c_last,
                                                             S * cdim))
    pp["bp"] = jnp.asarray(np.tile(np.asarray(params["bp"], np.float32), S)
                           .reshape(1, S * cdim))
    op_rows = max(op_rows, (S + 4) * nb)
    op_cols = max(op_cols, 5 * S * c_last)
    pp["plan"] = dict(B=nb, cc0=cc0, cdim=cdim, S=S, c_last=c_last,
                      blocks=blocks_plan, op_rows=op_rows, op_cols=op_cols)
    return pp


# ------------------------------ JAX reference --------------------------------

def _conv_nchw(x, w, pad):
    return lax.conv_general_dilated(
        x, w, window_strides=(1, 1), padding=[(pad, pad), (pad, pad)],
        dimension_numbers=("NCHW", "OIHW", "NCHW"),
        precision=lax.Precision.HIGHEST)


def _bn_eval_nchw(x, bn):
    s = bn["gamma"] / jnp.sqrt(bn["var"] + BN_EPS)
    t = bn["beta"] - bn["mean"] * s
    return x * s[None, :, None, None] + t[None, :, None, None]


def reference_forward(z, params):
    """Pure-JAX mirror of the PyTorch Decoder_Res forward (eval-mode BN)."""
    B = z.shape[0]
    cc0 = params["channels"][-1]
    y = jnp.maximum(jnp.dot(z, params["wfc"], precision=lax.Precision.HIGHEST)
                    + params["bfc"], 0.0)
    y = y.reshape(B, cc0, 4, 4)
    for blk in params["blocks"]:
        idt = _conv_nchw(y, blk["wexp"], 0) if blk["wexp"] is not None else y
        h = _leaky(_bn_eval_nchw(_conv_nchw(y, blk["w1"], 1), blk["bn1"]))
        h = _bn_eval_nchw(_conv_nchw(h, blk["w2"], 1), blk["bn2"])
        y = _leaky(h + idt)
        if blk["upsample"]:
            y = jnp.repeat(jnp.repeat(y, 2, axis=2), 2, axis=3)
    return _conv_nchw(y, params["wp"], 2) + params["bp"][None, :, None, None]


# ---------------------------------- main --------------------------------------

if __name__ == "__main__":
    key = jax.random.PRNGKey(0)
    kz, kparam = jax.random.split(key)

    # Small config consistent with the module: 2**len(channels) * 4 == image_size
    batch, hdim, cdim = 2, 32, 3
    channels = [8, 16]
    image_size = 2 ** len(channels) * 4          # 16

    z = jax.random.normal(kz, (batch, hdim), jnp.float32)
    params = init_params(kparam, hdim, channels, cdim)
    pparams = prepare_pallas_params(params, batch)

    out = decoder_res_forward(z, pparams)
    out = jax.block_until_ready(out)
    assert out.shape == (batch, cdim, image_size, image_size)

    ref = jax.block_until_ready(reference_forward(z, params))
    max_err = float(jnp.max(jnp.abs(out - ref)))
    # Tolerance covers MXU bf16-pass rounding accumulated across the ~8 chained
    # matmuls; any structural/layout bug would show up as O(1) error.
    assert max_err < 5e-2, f"max abs err {max_err}"

    print("KERNEL_OK")
</pallas_src>

<mosaic_0001>
module attributes {stable_mosaic.version = 11 : i64} {
  func.func @kernel(%arg0: memref<2x32xf32, #tpu.memory_space<vmem>>, %arg1: memref<32x256xf32, #tpu.memory_space<vmem>>, %arg2: memref<1x256xf32, #tpu.memory_space<vmem>>, %arg3: memref<192x64xf32, #tpu.memory_space<vmem>>, %arg4: memref<1x64xf32, #tpu.memory_space<vmem>>, %arg5: memref<192x64xf32, #tpu.memory_space<vmem>>, %arg6: memref<1x64xf32, #tpu.memory_space<vmem>>, %arg7: memref<16x8xf32, #tpu.memory_space<vmem>>, %arg8: memref<64x128xf32, #tpu.memory_space<vmem>>, %arg9: memref<384x64xf32, #tpu.memory_space<vmem>>, %arg10: memref<1x64xf32, #tpu.memory_space<vmem>>, %arg11: memref<192x64xf32, #tpu.memory_space<vmem>>, %arg12: memref<1x64xf32, #tpu.memory_space<vmem>>, %arg13: memref<128x64xf32, #tpu.memory_space<vmem>>, %arg14: memref<32x16xf32, #tpu.memory_space<vmem>>, %arg15: memref<64x128xf32, #tpu.memory_space<vmem>>, %arg16: memref<384x128xf32, #tpu.memory_space<vmem>>, %arg17: memref<1x128xf32, #tpu.memory_space<vmem>>, %arg18: memref<384x128xf32, #tpu.memory_space<vmem>>, %arg19: memref<1x128xf32, #tpu.memory_space<vmem>>, %arg20: memref<640x48xf32, #tpu.memory_space<vmem>>, %arg21: memref<1x48xf32, #tpu.memory_space<vmem>>, %arg22: memref<32x48xf32, #tpu.memory_space<vmem>>, %arg23: memref<40x640xf32, #tpu.memory_space<vmem>>, %arg24: memref<2x256xf32, #tpu.memory_space<vmem>>, %arg25: memref<8x64xf32, #tpu.memory_space<vmem>>) attributes {dimension_semantics = [], scalar_prefetch = 0 : i64, scratch_operands = 3 : i64, tpu.core_type = #tpu.core_type<tc>} {
    %c0 = arith.constant 0 : index
    %c0_0 = arith.constant 0 : index
    %0 = vector.load %arg0[%c0, %c0_0] : memref<2x32xf32, #tpu.memory_space<vmem>>, vector<2x32xf32>
    %c0_1 = arith.constant 0 : index
    %c0_2 = arith.constant 0 : index
    %1 = vector.load %arg1[%c0_1, %c0_2] : memref<32x256xf32, #tpu.memory_space<vmem>>, vector<32x256xf32>
    %cst = arith.constant dense<0.000000e+00> : vector<2x256xf32>
    %2 = tpu.matmul %0, %1, %cst {dimension_numbers = #tpu.dot_dimension_numbers<[1], [0], [0], [1], [0, 0, 1, 1], [], []>} : vector<2x32xf32>, vector<32x256xf32>, vector<2x256xf32> -> vector<2x256xf32>
    %c0_3 = arith.constant 0 : index
    %c0_4 = arith.constant 0 : index
    %3 = vector.load %arg2[%c0_3, %c0_4] : memref<1x256xf32, #tpu.memory_space<vmem>>, vector<1x256xf32>
    %4 = vector.broadcast %3 : vector<1x256xf32> to vector<2x256xf32>
    %5 = arith.addf %2, %4 : vector<2x256xf32>
    %cst_5 = arith.constant 0.000000e+00 : f32
    %6 = vector.broadcast %cst_5 : f32 to vector<2x256xf32>
    %7 = arith.maximumf %5, %6 : vector<2x256xf32>
    %c0_6 = arith.constant 0 : index
    %c0_7 = arith.constant 0 : index
    %8 = vector.load %arg24[%c0_6, %c0_7] : memref<2x256xf32, #tpu.memory_space<vmem>>, vector<2x256xf32>
    tpu.vector_store %arg24[%c0_6, %c0_7], %7 {strides = array<i32>} : memref<2x256xf32, #tpu.memory_space<vmem>>, vector<2x256xf32>,
    %c0_8 = arith.constant 0 : index
    %c0_9 = arith.constant 0 : index
    %9 = vector.load %arg24[%c0_8, %c0_9] : memref<2x256xf32, #tpu.memory_space<vmem>>, vector<2x64xf32>
    %c0_10 = arith.constant 0 : index
    %c0_11 = arith.constant 0 : index
    %10 = vector.load %arg25[%c0_10, %c0_11] : memref<8x64xf32, #tpu.memory_space<vmem>>, vector<2x64xf32>
    tpu.vector_store %arg25[%c0_10, %c0_11], %9 {strides = array<i32>} : memref<8x64xf32, #tpu.memory_space<vmem>>, vector<2x64xf32>,
    %c0_12 = arith.constant 0 : index
    %c64 = arith.constant 64 : index
    %11 = vector.load %arg24[%c0_12, %c64] : memref<2x256xf32, #tpu.memory_space<vmem>>, vector<2x64xf32>
    %c2 = arith.constant 2 : index
    %c0_13 = arith.constant 0 : index
    %12 = vector.load %arg25[%c2, %c0_13] : memref<8x64xf32, #tpu.memory_space<vmem>>, vector<2x64xf32>
    tpu.vector_store %arg25[%c2, %c0_13], %11 {strides = array<i32>} : memref<8x64xf32, #tpu.memory_space<vmem>>, vector<2x64xf32>,
    %c0_14 = arith.constant 0 : index
    %c128 = arith.constant 128 : index
    %13 = vector.load %arg24[%c0_14, %c128] : memref<2x256xf32, #tpu.memory_space<vmem>>, vector<2x64xf32>
    %c4 = arith.constant 4 : index
    %c0_15 = arith.constant 0 : index
    %14 = vector.load %arg25[%c4, %c0_15] : memref<8x64xf32, #tpu.memory_space<vmem>>, vector<2x64xf32>
    tpu.vector_store %arg25[%c4, %c0_15], %13 {strides = array<i32>} : memref<8x64xf32, #tpu.memory_space<vmem>>, vector<2x64xf32>,
    %c0_16 = arith.constant 0 : index
    %c192 = arith.constant 192 : index
    %15 = vector.load %arg24[%c0_16, %c192] : memref<2x256xf32, #tpu.memory_space<vmem>>, vector<2x64xf32>
    %c6 = arith.constant 6 : index
    %c0_17 = arith.constant 0 : index
    %16 = vector.load %arg25[%c6, %c0_17] : memref<8x64xf32, #tpu.memory_space<vmem>>, vector<2x64xf32>
    tpu.vector_store %arg25[%c6, %c0_17], %15 {strides = array<i32>} : memref<8x64xf32, #tpu.memory_space<vmem>>, vector<2x64xf32>,
    %c0_18 = arith.constant 0 : index
    %c0_19 = arith.constant 0 : index
    %17 = vector.load %arg25[%c0_18, %c0_19] : memref<8x64xf32, #tpu.memory_space<vmem>>, vector<8x64xf32>
    %cst_20 = arith.constant 0.000000e+00 : f32
    %18 = vector.broadcast %cst_20 : f32 to vector<8x192xf32>
    %c2_21 = arith.constant 2 : index
    %c0_22 = arith.constant 0 : index
    %19 = vector.load %arg23[%c2_21, %c0_22] : memref<40x640xf32, #tpu.memory_space<vmem>>, vector<8x192xf32>
    tpu.vector_store %arg23[%c2_21, %c0_22], %18 {strides = array<i32>} : memref<40x640xf32, #tpu.memory_space<vmem>>, vector<8x192xf32>,
    %c4_23 = arith.constant 4 : index
    %c0_24 = arith.constant 0 : index
    %20 = vector.load %arg23[%c4_23, %c0_24] : memref<40x640xf32, #tpu.memory_space<vmem>>, vector<8x64xf32>
    tpu.vector_store %arg23[%c4_23, %c0_24], %17 {strides = array<i32>} : memref<40x640xf32, #tpu.memory_space<vmem>>, vector<8x64xf32>,
    %c2_25 = arith.constant 2 : index
    %c64_26 = arith.constant 64 : index
    %21 = vector.load %arg23[%c2_25, %c64_26] : memref<40x640xf32, #tpu.memory_space<vmem>>, vector<8x64xf32>
    tpu.vector_store %arg23[%c2_25, %c64_26], %17 {strides = array<i32>} : memref<40x640xf32, #tpu.memory_space<vmem>>, vector<8x64xf32>,
    %c0_27 = arith.constant 0 : index
    %c128_28 = arith.constant 128 : index
    %22 = vector.load %arg23[%c0_27, %c128_28] : memref<40x640xf32, #tpu.memory_space<vmem>>, vector<8x64xf32>
    tpu.vector_store %arg23[%c0_27, %c128_28], %17 {strides = array<i32>} : memref<40x640xf32, #tpu.memory_space<vmem>>, vector<8x64xf32>,
    %c2_29 = arith.constant 2 : index
    %c0_30 = arith.constant 0 : index
    %23 = vector.load %arg23[%c2_29, %c0_30] : memref<40x640xf32, #tpu.memory_space<vmem>>, vector<8x192xf32>
    %c0_31 = arith.constant 0 : index
    %c0_32 = arith.constant 0 : index
    %24 = vector.load %arg3[%c0_31, %c0_32] : memref<192x64xf32, #tpu.memory_space<vmem>>, vector<192x64xf32>
    %cst_33 = arith.constant dense<0.000000e+00> : vector<8x64xf32>
    %25 = tpu.matmul %23, %24, %cst_33 {dimension_numbers = #tpu.dot_dimension_numbers<[1], [0], [0], [1], [0, 0, 1, 1], [], []>} : vector<8x192xf32>, vector<192x64xf32>, vector<8x64xf32> -> vector<8x64xf32>
    %c0_34 = arith.constant 0 : index
    %c0_35 = arith.constant 0 : index
    %26 = vector.load %arg4[%c0_34, %c0_35] : memref<1x64xf32, #tpu.memory_space<vmem>>, vector<1x64xf32>
    %27 = vector.broadcast %26 : vector<1x64xf32> to vector<8x64xf32>
    %28 = arith.addf %25, %27 : vector<8x64xf32>
    %cst_36 = arith.constant 0.000000e+00 : f32
    %29 = vector.broadcast %cst_36 : f32 to vector<8x64xf32>
    %30 = arith.cmpf ogt, %28, %29 : vector<8x64xf32>
    %cst_37 = arith.constant 2.000000e-01 : f32
    %31 = vector.broadcast %cst_37 : f32 to vector<8x64xf32>
    %32 = arith.mulf %31, %28 : vector<8x64xf32>
    %33 = arith.select %30, %28, %32 : vector<8x64xi1>, vector<8x64xf32>
    %cst_38 = arith.constant 0.000000e+00 : f32
    %34 = vector.broadcast %cst_38 : f32 to vector<8x192xf32>
    %c2_39 = arith.constant 2 : index
    %c0_40 = arith.constant 0 : index
    %35 = vector.load %arg23[%c2_39, %c0_40] : memref<40x640xf32, #tpu.memory_space<vmem>>, vector<8x192xf32>
    tpu.vector_store %arg23[%c2_39, %c0_40], %34 {strides = array<i32>} : memref<40x640xf32, #tpu.memory_space<vmem>>, vector<8x192xf32>,
    %c4_41 = arith.constant 4 : index
    %c0_42 = arith.constant 0 : index
    %36 = vector.load %arg23[%c4_41, %c0_42] : memref<40x640xf32, #tpu.memory_space<vmem>>, vector<8x64xf32>
    tpu.vector_store %arg23[%c4_41, %c0_42], %33 {strides = array<i32>} : memref<40x640xf32, #tpu.memory_space<vmem>>, vector<8x64xf32>,
    %c2_43 = arith.constant 2 : index
    %c64_44 = arith.constant 64 : index
    %37 = vector.load %arg23[%c2_43, %c64_44] : memref<40x640xf32, #tpu.memory_space<vmem>>, vector<8x64xf32>
    tpu.vector_store %arg23[%c2_43, %c64_44], %33 {strides = array<i32>} : memref<40x640xf32, #tpu.memory_space<vmem>>, vector<8x64xf32>,
    %c0_45 = arith.constant 0 : index
    %c128_46 = arith.constant 128 : index
    %38 = vector.load %arg23[%c0_45, %c128_46] : memref<40x640xf32, #tpu.memory_space<vmem>>, vector<8x64xf32>
    tpu.vector_store %arg23[%c0_45, %c128_46], %33 {strides = array<i32>} : memref<40x640xf32, #tpu.memory_space<vmem>>, vector<8x64xf32>,
    %c2_47 = arith.constant 2 : index
    %c0_48 = arith.constant 0 : index
    %39 = vector.load %arg23[%c2_47, %c0_48] : memref<40x640xf32, #tpu.memory_space<vmem>>, vector<8x192xf32>
    %c0_49 = arith.constant 0 : index
    %c0_50 = arith.constant 0 : index
    %40 = vector.load %arg5[%c0_49, %c0_50] : memref<192x64xf32, #tpu.memory_space<vmem>>, vector<192x64xf32>
    %cst_51 = arith.constant dense<0.000000e+00> : vector<8x64xf32>
    %41 = tpu.matmul %39, %40, %cst_51 {dimension_numbers = #tpu.dot_dimension_numbers<[1], [0], [0], [1], [0, 0, 1, 1], [], []>} : vector<8x192xf32>, vector<192x64xf32>, vector<8x64xf32> -> vector<8x64xf32>
    %c0_52 = arith.constant 0 : index
    %c0_53 = arith.constant 0 : index
    %42 = vector.load %arg6[%c0_52, %c0_53] : memref<1x64xf32, #tpu.memory_space<vmem>>, vector<1x64xf32>
    %43 = vector.broadcast %42 : vector<1x64xf32> to vector<8x64xf32>
    %44 = arith.addf %41, %43 : vector<8x64xf32>
    %45 = arith.addf %44, %17 : vector<8x64xf32>
    %cst_54 = arith.constant 0.000000e+00 : f32
    %46 = vector.broadcast %cst_54 : f32 to vector<8x64xf32>
    %47 = arith.cmpf ogt, %45, %46 : vector<8x64xf32>
    %cst_55 = arith.constant 2.000000e-01 : f32
    %48 = vector.broadcast %cst_55 : f32 to vector<8x64xf32>
    %49 = arith.mulf %48, %45 : vector<8x64xf32>
    %50 = arith.select %47, %45, %49 : vector<8x64xi1>, vector<8x64xf32>
    %c0_56 = arith.constant 0 : index
    %c0_57 = arith.constant 0 : index
    %51 = vector.load %arg7[%c0_56, %c0_57] : memref<16x8xf32, #tpu.memory_space<vmem>>, vector<16x8xf32>
    %cst_58 = arith.constant dense<0.000000e+00> : vector<16x64xf32>
    %52 = tpu.matmul %51, %50, %cst_58 {dimension_numbers = #tpu.dot_dimension_numbers<[1], [0], [0], [1], [0, 0, 1, 1], [], []>} : vector<16x8xf32>, vector<8x64xf32>, vector<16x64xf32> -> vector<16x64xf32>
    %c0_59 = arith.constant 0 : index
    %c0_60 = arith.constant 0 : index
    %53 = vector.load %arg8[%c0_59, %c0_60] : memref<64x128xf32, #tpu.memory_space<vmem>>, vector<64x128xf32>
    %cst_61 = arith.constant dense<0.000000e+00> : vector<16x128xf32>
    %54 = tpu.matmul %52, %53, %cst_61 {dimension_numbers = #tpu.dot_dimension_numbers<[1], [0], [0], [1], [0, 0, 1, 1], [], []>} : vector<16x64xf32>, vector<64x128xf32>, vector<16x128xf32> -> vector<16x128xf32>
    %c0_62 = arith.constant 0 : index
    %c0_63 = arith.constant 0 : index
    %55 = vector.load %arg13[%c0_62, %c0_63] : memref<128x64xf32, #tpu.memory_space<vmem>>, vector<128x64xf32>
    %cst_64 = arith.constant dense<0.000000e+00> : vector<16x64xf32>
    %56 = tpu.matmul %54, %55, %cst_64 {dimension_numbers = #tpu.dot_dimension_numbers<[1], [0], [0], [1], [0, 0, 1, 1], [], []>} : vector<16x128xf32>, vector<128x64xf32>, vector<16x64xf32> -> vector<16x64xf32>
    %cst_65 = arith.constant 0.000000e+00 : f32
    %57 = vector.broadcast %cst_65 : f32 to vector<16x384xf32>
    %c2_66 = arith.constant 2 : index
    %c0_67 = arith.constant 0 : index
    %58 = vector.load %arg23[%c2_66, %c0_67] : memref<40x640xf32, #tpu.memory_space<vmem>>, vector<16x384xf32>
    tpu.vector_store %arg23[%c2_66, %c0_67], %57 {strides = array<i32>} : memref<40x640xf32, #tpu.memory_space<vmem>>, vector<16x384xf32>,
    %c4_68 = arith.constant 4 : index
    %c0_69 = arith.constant 0 : index
    %59 = vector.load %arg23[%c4_68, %c0_69] : memref<40x640xf32, #tpu.memory_space<vmem>>, vector<16x128xf32>
    tpu.vector_store %arg23[%c4_68, %c0_69], %54 {strides = array<i32>} : memref<40x640xf32, #tpu.memory_space<vmem>>, vector<16x128xf32>,
    %c2_70 = arith.constant 2 : index
    %c128_71 = arith.constant 128 : index
    %60 = vector.load %arg23[%c2_70, %c128_71] : memref<40x640xf32, #tpu.memory_space<vmem>>, vector<16x128xf32>
    tpu.vector_store %arg23[%c2_70, %c128_71], %54 {strides = array<i32>} : memref<40x640xf32, #tpu.memory_space<vmem>>, vector<16x128xf32>,
    %c0_72 = arith.constant 0 : index
    %c256 = arith.constant 256 : index
    %61 = vector.load %arg23[%c0_72, %c256] : memref<40x640xf32, #tpu.memory_space<vmem>>, vector<16x128xf32>
    tpu.vector_store %arg23[%c0_72, %c256], %54 {strides = array<i32>} : memref<40x640xf32, #tpu.memory_space<vmem>>, vector<16x128xf32>,
    %c2_73 = arith.constant 2 : index
    %c0_74 = arith.constant 0 : index
    %62 = vector.load %arg23[%c2_73, %c0_74] : memref<40x640xf32, #tpu.memory_space<vmem>>, vector<16x384xf32>
    %c0_75 = arith.constant 0 : index
    %c0_76 = arith.constant 0 : index
    %63 = vector.load %arg9[%c0_75, %c0_76] : memref<384x64xf32, #tpu.memory_space<vmem>>, vector<384x64xf32>
    %cst_77 = arith.constant dense<0.000000e+00> : vector<16x64xf32>
    %64 = tpu.matmul %62, %63, %cst_77 {dimension_numbers = #tpu.dot_dimension_numbers<[1], [0], [0], [1], [0, 0, 1, 1], [], []>} : vector<16x384xf32>, vector<384x64xf32>, vector<16x64xf32> -> vector<16x64xf32>
    %c0_78 = arith.constant 0 : index
    %c0_79 = arith.constant 0 : index
    %65 = vector.load %arg10[%c0_78, %c0_79] : memref<1x64xf32, #tpu.memory_space<vmem>>, vector<1x64xf32>
    %66 = vector.broadcast %65 : vector<1x64xf32> to vector<16x64xf32>
    %67 = arith.addf %64, %66 : vector<16x64xf32>
    %cst_80 = arith.constant 0.000000e+00 : f32
    %68 = vector.broadcast %cst_80 : f32 to vector<16x64xf32>
    %69 = arith.cmpf ogt, %67, %68 : vector<16x64xf32>
    %cst_81 = arith.constant 2.000000e-01 : f32
    %70 = vector.broadcast %cst_81 : f32 to vector<16x64xf32>
    %71 = arith.mulf %70, %67 : vector<16x64xf32>
    %72 = arith.select %69, %67, %71 : vector<16x64xi1>, vector<16x64xf32>
    %cst_82 = arith.constant 0.000000e+00 : f32
    %73 = vector.broadcast %cst_82 : f32 to vector<16x192xf32>
    %c2_83 = arith.constant 2 : index
    %c0_84 = arith.constant 0 : index
    %74 = vector.load %arg23[%c2_83, %c0_84] : memref<40x640xf32, #tpu.memory_space<vmem>>, vector<16x192xf32>
    tpu.vector_store %arg23[%c2_83, %c0_84], %73 {strides = array<i32>} : memref<40x640xf32, #tpu.memory_space<vmem>>, vector<16x192xf32>,
    %c4_85 = arith.constant 4 : index
    %c0_86 = arith.constant 0 : index
    %75 = vector.load %arg23[%c4_85, %c0_86] : memref<40x640xf32, #tpu.memory_space<vmem>>, vector<16x64xf32>
    tpu.vector_store %arg23[%c4_85, %c0_86], %72 {strides = array<i32>} : memref<40x640xf32, #tpu.memory_space<vmem>>, vector<16x64xf32>,
    %c2_87 = arith.constant 2 : index
    %c64_88 = arith.constant 64 : index
    %76 = vector.load %arg23[%c2_87, %c64_88] : memref<40x640xf32, #tpu.memory_space<vmem>>, vector<16x64xf32>
    tpu.vector_store %arg23[%c2_87, %c64_88], %72 {strides = array<i32>} : memref<40x640xf32, #tpu.memory_space<vmem>>, vector<16x64xf32>,
    %c0_89 = arith.constant 0 : index
    %c128_90 = arith.constant 128 : index
    %77 = vector.load %arg23[%c0_89, %c128_90] : memref<40x640xf32, #tpu.memory_space<vmem>>, vector<16x64xf32>
    tpu.vector_store %arg23[%c0_89, %c128_90], %72 {strides = array<i32>} : memref<40x640xf32, #tpu.memory_space<vmem>>, vector<16x64xf32>,
    %c2_91 = arith.constant 2 : index
    %c0_92 = arith.constant 0 : index
    %78 = vector.load %arg23[%c2_91, %c0_92] : memref<40x640xf32, #tpu.memory_space<vmem>>, vector<16x192xf32>
    %c0_93 = arith.constant 0 : index
    %c0_94 = arith.constant 0 : index
    %79 = vector.load %arg11[%c0_93, %c0_94] : memref<192x64xf32, #tpu.memory_space<vmem>>, vector<192x64xf32>
    %cst_95 = arith.constant dense<0.000000e+00> : vector<16x64xf32>
    %80 = tpu.matmul %78, %79, %cst_95 {dimension_numbers = #tpu.dot_dimension_numbers<[1], [0], [0], [1], [0, 0, 1, 1], [], []>} : vector<16x192xf32>, vector<192x64xf32>, vector<16x64xf32> -> vector<16x64xf32>
    %c0_96 = arith.constant 0 : index
    %c0_97 = arith.constant 0 : index
    %81 = vector.load %arg12[%c0_96, %c0_97] : memref<1x64xf32, #tpu.memory_space<vmem>>, vector<1x64xf32>
    %82 = vector.broadcast %81 : vector<1x64xf32> to vector<16x64xf32>
    %83 = arith.addf %80, %82 : vector<16x64xf32>
    %84 = arith.addf %83, %56 : vector<16x64xf32>
    %cst_98 = arith.constant 0.000000e+00 : f32
    %85 = vector.broadcast %cst_98 : f32 to vector<16x64xf32>
    %86 = arith.cmpf ogt, %84, %85 : vector<16x64xf32>
    %cst_99 = arith.constant 2.000000e-01 : f32
    %87 = vector.broadcast %cst_99 : f32 to vector<16x64xf32>
    %88 = arith.mulf %87, %84 : vector<16x64xf32>
    %89 = arith.select %86, %84, %88 : vector<16x64xi1>, vector<16x64xf32>
    %c0_100 = arith.constant 0 : index
    %c0_101 = arith.constant 0 : index
    %90 = vector.load %arg14[%c0_100, %c0_101] : memref<32x16xf32, #tpu.memory_space<vmem>>, vector<32x16xf32>
    %cst_102 = arith.constant dense<0.000000e+00> : vector<32x64xf32>
    %91 = tpu.matmul %90, %89, %cst_102 {dimension_numbers = #tpu.dot_dimension_numbers<[1], [0], [0], [1], [0, 0, 1, 1], [], []>} : vector<32x16xf32>, vector<16x64xf32>, vector<32x64xf32> -> vector<32x64xf32>
    %c0_103 = arith.constant 0 : index
    %c0_104 = arith.constant 0 : index
    %92 = vector.load %arg15[%c0_103, %c0_104] : memref<64x128xf32, #tpu.memory_space<vmem>>, vector<64x128xf32>
    %cst_105 = arith.constant dense<0.000000e+00> : vector<32x128xf32>
    %93 = tpu.matmul %91, %92, %cst_105 {dimension_numbers = #tpu.dot_dimension_numbers<[1], [0], [0], [1], [0, 0, 1, 1], [], []>} : vector<32x64xf32>, vector<64x128xf32>, vector<32x128xf32> -> vector<32x128xf32>
    %cst_106 = arith.constant 0.000000e+00 : f32
    %94 = vector.broadcast %cst_106 : f32 to vector<32x384xf32>
    %c2_107 = arith.constant 2 : index
    %c0_108 = arith.constant 0 : index
    %95 = vector.load %arg23[%c2_107, %c0_108] : memref<40x640xf32, #tpu.memory_space<vmem>>, vector<32x384xf32>
    tpu.vector_store %arg23[%c2_107, %c0_108], %94 {strides = array<i32>} : memref<40x640xf32, #tpu.memory_space<vmem>>, vector<32x384xf32>,
    %c4_109 = arith.constant 4 : index
    %c0_110 = arith.constant 0 : index
    %96 = vector.load %arg23[%c4_109, %c0_110] : memref<40x640xf32, #tpu.memory_space<vmem>>, vector<32x128xf32>
    tpu.vector_store %arg23[%c4_109, %c0_110], %93 {strides = array<i32>} : memref<40x640xf32, #tpu.memory_space<vmem>>, vector<32x128xf32>,
    %c2_111 = arith.constant 2 : index
    %c128_112 = arith.constant 128 : index
    %97 = vector.load %arg23[%c2_111, %c128_112] : memref<40x640xf32, #tpu.memory_space<vmem>>, vector<32x128xf32>
    tpu.vector_store %arg23[%c2_111, %c128_112], %93 {strides = array<i32>} : memref<40x640xf32, #tpu.memory_space<vmem>>, vector<32x128xf32>,
    %c0_113 = arith.constant 0 : index
    %c256_114 = arith.constant 256 : index
    %98 = vector.load %arg23[%c0_113, %c256_114] : memref<40x640xf32, #tpu.memory_space<vmem>>, vector<32x128xf32>
    tpu.vector_store %arg23[%c0_113, %c256_114], %93 {strides = array<i32>} : memref<40x640xf32, #tpu.memory_space<vmem>>, vector<32x128xf32>,
    %c2_115 = arith.constant 2 : index
    %c0_116 = arith.constant 0 : index
    %99 = vector.load %arg23[%c2_115, %c0_116] : memref<40x640xf32, #tpu.memory_space<vmem>>, vector<32x384xf32>
    %c0_117 = arith.constant 0 : index
    %c0_118 = arith.constant 0 : index
    %100 = vector.load %arg16[%c0_117, %c0_118] : memref<384x128xf32, #tpu.memory_space<vmem>>, vector<384x128xf32>
    %cst_119 = arith.constant dense<0.000000e+00> : vector<32x128xf32>
    %101 = tpu.matmul %99, %100, %cst_119 {dimension_numbers = #tpu.dot_dimension_numbers<[1], [0], [0], [1], [0, 0, 1, 1], [], []>} : vector<32x384xf32>, vector<384x128xf32>, vector<32x128xf32> -> vector<32x128xf32>
    %c0_120 = arith.constant 0 : index
    %c0_121 = arith.constant 0 : index
    %102 = vector.load %arg17[%c0_120, %c0_121] : memref<1x128xf32, #tpu.memory_space<vmem>>, vector<1x128xf32>
    %103 = vector.broadcast %102 : vector<1x128xf32> to vector<32x128xf32>
    %104 = arith.addf %101, %103 : vector<32x128xf32>
    %cst_122 = arith.constant 0.000000e+00 : f32
    %105 = vector.broadcast %cst_122 : f32 to vector<32x128xf32>
    %106 = arith.cmpf ogt, %104, %105 : vector<32x128xf32>
    %cst_123 = arith.constant 2.000000e-01 : f32
    %107 = vector.broadcast %cst_123 : f32 to vector<32x128xf32>
    %108 = arith.mulf %107, %104 : vector<32x128xf32>
    %109 = arith.select %106, %104, %108 : vector<32x128xi1>, vector<32x128xf32>
    %cst_124 = arith.constant 0.000000e+00 : f32
    %110 = vector.broadcast %cst_124 : f32 to vector<32x384xf32>
    %c2_125 = arith.constant 2 : index
    %c0_126 = arith.constant 0 : index
    %111 = vector.load %arg23[%c2_125, %c0_126] : memref<40x640xf32, #tpu.memory_space<vmem>>, vector<32x384xf32>
    tpu.vector_store %arg23[%c2_125, %c0_126], %110 {strides = array<i32>} : memref<40x640xf32, #tpu.memory_space<vmem>>, vector<32x384xf32>,
    %c4_127 = arith.constant 4 : index
    %c0_128 = arith.constant 0 : index
    %112 = vector.load %arg23[%c4_127, %c0_128] : memref<40x640xf32, #tpu.memory_space<vmem>>, vector<32x128xf32>
    tpu.vector_store %arg23[%c4_127, %c0_128], %109 {strides = array<i32>} : memref<40x640xf32, #tpu.memory_space<vmem>>, vector<32x128xf32>,
    %c2_129 = arith.constant 2 : index
    %c128_130 = arith.constant 128 : index
    %113 = vector.load %arg23[%c2_129, %c128_130] : memref<40x640xf32, #tpu.memory_space<vmem>>, vector<32x128xf32>
    tpu.vector_store %arg23[%c2_129, %c128_130], %109 {strides = array<i32>} : memref<40x640xf32, #tpu.memory_space<vmem>>, vector<32x128xf32>,
    %c0_131 = arith.constant 0 : index
    %c256_132 = arith.constant 256 : index
    %114 = vector.load %arg23[%c0_131, %c256_132] : memref<40x640xf32, #tpu.memory_space<vmem>>, vector<32x128xf32>
    tpu.vector_store %arg23[%c0_131, %c256_132], %109 {strides = array<i32>} : memref<40x640xf32, #tpu.memory_space<vmem>>, vector<32x128xf32>,
    %c2_133 = arith.constant 2 : index
    %c0_134 = arith.constant 0 : index
    %115 = vector.load %arg23[%c2_133, %c0_134] : memref<40x640xf32, #tpu.memory_space<vmem>>, vector<32x384xf32>
    %c0_135 = arith.constant 0 : index
    %c0_136 = arith.constant 0 : index
    %116 = vector.load %arg18[%c0_135, %c0_136] : memref<384x128xf32, #tpu.memory_space<vmem>>, vector<384x128xf32>
    %cst_137 = arith.constant dense<0.000000e+00> : vector<32x128xf32>
    %117 = tpu.matmul %115, %116, %cst_137 {dimension_numbers = #tpu.dot_dimension_numbers<[1], [0], [0], [1], [0, 0, 1, 1], [], []>} : vector<32x384xf32>, vector<384x128xf32>, vector<32x128xf32> -> vector<32x128xf32>
    %c0_138 = arith.constant 0 : index
    %c0_139 = arith.constant 0 : index
    %118 = vector.load %arg19[%c0_138, %c0_139] : memref<1x128xf32, #tpu.memory_space<vmem>>, vector<1x128xf32>
    %119 = vector.broadcast %118 : vector<1x128xf32> to vector<32x128xf32>
    %120 = arith.addf %117, %119 : vector<32x128xf32>
    %121 = arith.addf %120, %93 : vector<32x128xf32>
    %cst_140 = arith.constant 0.000000e+00 : f32
    %122 = vector.broadcast %cst_140 : f32 to vector<32x128xf32>
    %123 = arith.cmpf ogt, %121, %122 : vector<32x128xf32>
    %cst_141 = arith.constant 2.000000e-01 : f32
    %124 = vector.broadcast %cst_141 : f32 to vector<32x128xf32>
    %125 = arith.mulf %124, %121 : vector<32x128xf32>
    %126 = arith.select %123, %121, %125 : vector<32x128xi1>, vector<32x128xf32>
    %cst_142 = arith.constant 0.000000e+00 : f32
    %127 = vector.broadcast %cst_142 : f32 to vector<32x640xf32>
    %c4_143 = arith.constant 4 : index
    %c0_144 = arith.constant 0 : index
    %128 = vector.load %arg23[%c4_143, %c0_144] : memref<40x640xf32, #tpu.memory_space<vmem>>, vector<32x640xf32>
    tpu.vector_store %arg23[%c4_143, %c0_144], %127 {strides = array<i32>} : memref<40x640xf32, #tpu.memory_space<vmem>>, vector<32x640xf32>,
    %c8 = arith.constant 8 : index
    %c0_145 = arith.constant 0 : index
    %129 = vector.load %arg23[%c8, %c0_145] : memref<40x640xf32, #tpu.memory_space<vmem>>, vector<32x128xf32>
    tpu.vector_store %arg23[%c8, %c0_145], %126 {strides = array<i32>} : memref<40x640xf32, #tpu.memory_space<vmem>>, vector<32x128xf32>,
    %c6_146 = arith.constant 6 : index
    %c128_147 = arith.constant 128 : index
    %130 = vector.load %arg23[%c6_146, %c128_147] : memref<40x640xf32, #tpu.memory_space<vmem>>, vector<32x128xf32>
    tpu.vector_store %arg23[%c6_146, %c128_147], %126 {strides = array<i32>} : memref<40x640xf32, #tpu.memory_space<vmem>>, vector<32x128xf32>,
    %c4_148 = arith.constant 4 : index
    %c256_149 = arith.constant 256 : index
    %131 = vector.load %arg23[%c4_148, %c256_149] : memref<40x640xf32, #tpu.memory_space<vmem>>, vector<32x128xf32>
    tpu.vector_store %arg23[%c4_148, %c256_149], %126 {strides = array<i32>} : memref<40x640xf32, #tpu.memory_space<vmem>>, vector<32x128xf32>,
    %c2_150 = arith.constant 2 : index
    %c384 = arith.constant 384 : index
    %132 = vector.load %arg23[%c2_150, %c384] : memref<40x640xf32, #tpu.memory_space<vmem>>, vector<32x128xf32>
    tpu.vector_store %arg23[%c2_150, %c384], %126 {strides = array<i32>} : memref<40x640xf32, #tpu.memory_space<vmem>>, vector<32x128xf32>,
    %c0_151 = arith.constant 0 : index
    %c512 = arith.constant 512 : index
    %133 = vector.load %arg23[%c0_151, %c512] : memref<40x640xf32, #tpu.memory_space<vmem>>, vector<32x128xf32>
    tpu.vector_store %arg23[%c0_151, %c512], %126 {strides = array<i32>} : memref<40x640xf32, #tpu.memory_space<vmem>>, vector<32x128xf32>,
    %c4_152 = arith.constant 4 : index
    %c0_153 = arith.constant 0 : index
    %134 = vector.load %arg23[%c4_152, %c0_153] : memref<40x640xf32, #tpu.memory_space<vmem>>, vector<32x640xf32>
    %c0_154 = arith.constant 0 : index
    %c0_155 = arith.constant 0 : index
    %135 = vector.load %arg20[%c0_154, %c0_155] : memref<640x48xf32, #tpu.memory_space<vmem>>, vector<640x48xf32>
    %cst_156 = arith.constant dense<0.000000e+00> : vector<32x48xf32>
    %136 = tpu.matmul %134, %135, %cst_156 {dimension_numbers = #tpu.dot_dimension_numbers<[1], [0], [0], [1], [0, 0, 1, 1], [], []>} : vector<32x640xf32>, vector<640x48xf32>, vector<32x48xf32> -> vector<32x48xf32>
    %c0_157 = arith.constant 0 : index
    %c0_158 = arith.constant 0 : index
    %137 = vector.load %arg21[%c0_157, %c0_158] : memref<1x48xf32, #tpu.memory_space<vmem>>, vector<1x48xf32>
    %138 = vector.broadcast %137 : vector<1x48xf32> to vector<32x48xf32>
    %139 = arith.addf %136, %138 : vector<32x48xf32>
    %c0_159 = arith.constant 0 : index
    %c0_160 = arith.constant 0 : index
    %140 = vector.load %arg22[%c0_159, %c0_160] : memref<32x48xf32, #tpu.memory_space<vmem>>, vector<32x48xf32>
    tpu.vector_store %arg22[%c0_159, %c0_160], %139 {strides = array<i32>} : memref<32x48xf32, #tpu.memory_space<vmem>>, vector<32x48xf32>,
    return
  }
}

</mosaic_0001>

<bundles_post_ra>
// kernel: tpu_custom_call.1
= control target key start
LH: loop header
LB: loop body
LE: loop exit
PB: predicated region body
PF: predicated region fallthrough
CT: control target
= control target key end

     0   :  { %s4865_s0 = inlined_call_operand.vmem [shape: f32[2,32], index: 0, kind: input, shape index: {}]   ;;  %s4866_s1 = inlined_call_operand.vmem [shape: f32[32,256], index: 1, kind: input, shape index: {}]   ;;  %s4867_s2 = inlined_call_operand.vmem [shape: f32[1,256], index: 2, kind: input, shape index: {}]   ;;  %s4868_s3 = inlined_call_operand.vmem [shape: f32[192,64], index: 3, kind: input, shape index: {}]   ;;  %s4869_s4 = inlined_call_operand.vmem [shape: f32[1,64], index: 4, kind: input, shape index: {}]   ;;  %s4870_s5 = inlined_call_operand.vmem [shape: f32[192,64], index: 5, kind: input, shape index: {}]   ;;  %s4871_s6 = inlined_call_operand.vmem [shape: f32[1,64], index: 6, kind: input, shape index: {}]   ;;  %s4872_s7 = inlined_call_operand.vmem [shape: f32[16,8], index: 7, kind: input, shape index: {}]   ;;  %s4873_s8 = inlined_call_operand.vmem [shape: f32[64,128], index: 8, kind: input, shape index: {}]   ;;  %s4874_s9 = inlined_call_operand.vmem [shape: f32[384,64], index: 9, kind: input, shape index: {}]   ;;  %s4875_s10 = inlined_call_operand.vmem [shape: f32[1,64], index: 10, kind: input, shape index: {}]   ;;  %s4876_s11 = inlined_call_operand.vmem [shape: f32[192,64], index: 11, kind: input, shape index: {}]   ;;  %s4877_s12 = inlined_call_operand.vmem [shape: f32[1,64], index: 12, kind: input, shape index: {}]   ;;  %s4878_s13 = inlined_call_operand.vmem [shape: f32[128,64], index: 13, kind: input, shape index: {}]   ;;  %s4879_s14 = inlined_call_operand.vmem [shape: f32[32,16], index: 14, kind: input, shape index: {}]   ;;  %s4880_s15 = inlined_call_operand.vmem [shape: f32[64,128], index: 15, kind: input, shape index: {}]   ;;  %s4881_s16 = inlined_call_operand.vmem [shape: f32[384,128], index: 16, kind: input, shape index: {}]   ;;  %s4882_s17 = inlined_call_operand.vmem [shape: f32[1,128], index: 17, kind: input, shape index: {}]   ;;  %s4883_s18 = inlined_call_operand.vmem [shape: f32[384,128], index: 18, kind: input, shape index: {}]   ;;  %s4884_s19 = inlined_call_operand.vmem [shape: f32[1,128], index: 19, kind: input, shape index: {}]   ;;  %s4885_s20 = inlined_call_operand.vmem [shape: f32[640,48], index: 20, kind: input, shape index: {}]   ;;  %s4886_s21 = inlined_call_operand.vmem [shape: f32[1,48], index: 21, kind: input, shape index: {}]   ;;  %s4887_s22 = inlined_call_operand.hbm [shape: f32[32,48], index: 22, kind: output, shape index: {}]  }
   0x1   :  { %4891 = sst [smem:[#allocation8_spill]] %s4865_s0 }
   0x2   :  { %4892 = sst [smem:[#allocation9_spill]] %s4866_s1 }
   0x3   :  { %4893 = sst [smem:[#allocation10_spill]] %s4867_s2 }
   0x4   :  { %4894 = sst [smem:[#allocation11_spill]] %s4868_s3 }
   0x5   :  { %4895 = sst [smem:[#allocation12_spill]] %s4869_s4 }
   0x6   :  { %4896 = sst [smem:[#allocation13_spill]] %s4870_s5 }
   0x7   :  { %4897 = sst [smem:[#allocation14_spill]] %s4871_s6 }
   0x8   :  { %s4898_s29 = sld [smem:[#allocation9_spill]]  ;;  %v3358_v4 = vmov 0.0  }
   0x9   :  { %161 = vmatprep.mubr.f32.mxu1 %v3358_v4  ;;  %214 = vst [vmem:[#allocation2] sm:$0xfc] %v3358_v4  ;;  %217 = vst [vmem:[#allocation2 + $0x28] sm:$0x3] %v3358_v4  ;;  %422 = vmatprep.subr.mxu0 %v3358_v4 }
   0xa   :  { %762 = vst [vmem:[#allocation2 + $0x10] sm:$0xfc] %v3358_v4  ;;  %766 = vst [vmem:[#allocation2 + $0x50] sm:$0x3] %v3358_v4 }
   0xb   :  { %767 = vst [vmem:[#allocation2 + $0x58] sm:$0x3] %v3358_v4  ;;  %768 = vst [vmem:[#allocation2 + $0x60] sm:$0x3] %v3358_v4 }
   0xc   :  { %1439 = vst [vmem:[#allocation2 + $0xa0] sm:$0x3] %v3358_v4  ;;  %1440 = vst [vmem:[#allocation2 + $0xa8] sm:$0x3] %v3358_v4 }
   0xd   :  { %1441 = vst [vmem:[#allocation2 + $0xb0] sm:$0x3] %v3358_v4  ;;  %2160 = vst [vmem:[#allocation2 + $0x18] sm:$0xf0] %v3358_v4 }
   0xe   :  { %v80_v0 = vld [vmem:[%s4898_s29 + $0x38] sm:$0xff]  ;;  %v79_v1 = vld [vmem:[%s4898_s29 + $0x30] sm:$0xff]  ;;  %v78_v2 = vld [vmem:[%s4898_s29 + $0x28] sm:$0xff]  ;;  %2161 = vst [vmem:[#allocation2 + $0x20] sm:$0xf0] %v3358_v4 }
   0xf   :  { %121 = vmatprep.subr.mxu1 %v80_v0  ;;  %v77_v3 = vld [vmem:[%s4898_s29 + $0x20] sm:$0xff]  ;;  %2180 = vst [vmem:[#allocation2 + $0xb8] sm:$0xf] %v3358_v4  ;;  %2181 = vst [vmem:[#allocation2 + $0xc0] sm:$0xf] %v3358_v4  ;;  %v76_v5 = vld [vmem:[%s4898_s29 + $0x18] sm:$0xff] }
  0x10   :  { %122 = vmatpush1.msra.mxu1 %v79_v1  ;;  %v75_v6 = vld [vmem:[%s4898_s29 + $0x10] sm:$0xff] }
  0x11   :  { %123 = vmatprep.subr.mxu1 %v78_v2 }
  0x12   :  { %27 = vsyncpa [#allocation6], 0  ;;  %124 = vmatpush1.msra.mxu1 %v77_v3  ;;  %v74_v7 = vld [vmem:[%s4898_s29 + $0x8] sm:$0xff]  ;;  %v73_v8 = vld [vmem:[%s4898_s29] sm:$0xff]  ;;  %s4899_s0 = sld [smem:[#allocation8_spill]]  ;;  %vm93_vm0 = vcmask 261120   ;;  %v83_v10 = vlaneseq }
  0x13   :  { %125 = vmatprep.subr.mxu1 %v76_v5  ;;  %vm183_vm1 = vcmask 517120   ;;  %s4900_s1 = sld [smem:[#allocation10_spill]]  ;;  %vm215_vm2 = vcmask 523266   ;;  %s3359_s5 = smov 64   ;;  %vm234_vm3 = vcmask 523264   ;;  %vm222_vm4 = vcmask 523268  }
  0x14   :  { %126 = vmatpush1.msra.mxu1 %v75_v6  ;;  %218 = vst.msk [vmem:[#allocation2 + $0x30] sm:$0x3] %vm183_vm1, %v3358_v4  ;;  %v84_v11 = vshrl.u32 %v83_v10, 7  ;;  %s4901_s25 = sld [smem:[#allocation11_spill]]  ;;  %vm224_vm5 = vcmask 519168   ;;  %vm275_vm6 = vcmask 1045504  }
  0x15   :  { %127 = vmatprep.subr.mxu1 %v74_v7  ;;  %216 = vst.msk [vmem:[#allocation2 + $0x8] sm:$0xfc] %vm215_vm2, %v3358_v4  ;;  %vm230_vm7 = vcmask 1048066   ;;  %vm232_vm8 = vcmask 1041920   ;;  %s4902_s23 = sld [smem:[#allocation13_spill]]  ;;  %vm498_vm10 = vcmask 64512  }
  0x16   :  { %128 = vmatpush1.msra.mxu1 %v73_v8  ;;  %v85_v12 = vsub.s32 0, %v84_v11  ;;  %v89_v14 = vsub.s32 1, %v84_v11  ;;  %s4904_s29 = sld [smem:[#allocation14_spill]]  ;;  %vm781_vm12 = vcmask 1041408   ;;  %vm771_vm13 = vcmask 1043456  }
  0x17   :  { %285 = vmatprep.subr.mxu1 %v3358_v4 }
  0x18   :  { %v72_v9 = vld [vmem:[%s4899_s0] sm:$0x3] }
  0x19   :  { %2723 = vmatmul.mubr.msk.f32.vlgmr.msra.gmra.mxu1 %vm93_vm0, %v72_v9  ;;  %v81_v13 = vld [vmem:[%s4900_s1] sm:$0x3]  ;;  %s4903_s1 = sld [smem:[#allocation12_spill]]  ;;  %vm1073_vm0 = vcmask 1048064  }
  0x1a   :  { %v86_v15 = vrot.slane %v81_v13, %v85_v12  ;;  %v90_v16 = vrot.slane %v81_v13, %v89_v14  ;;  %v255_v29 = vld [vmem:[%s4901_s25 + $0x78] sm:$0xff]  ;;  %v254_v30 = vld [vmem:[%s4901_s25 + $0x70] sm:$0xff]  ;;  %v253_v31 = vld [vmem:[%s4901_s25 + $0x68] sm:$0xff] }
  0x1b   :  { %v3532_v28 = vld [vmem:[#allocation2 + $0x30] sm:$0x3]  ;;  %286 = vmatpush1.msra.mxu1 %v255_v29  ;;  %v252_v32 = vld [vmem:[%s4901_s25 + $0x60] sm:$0xff]  ;;  %v251_v33 = vld [vmem:[%s4901_s25 + $0x58] sm:$0xff] }
  0x1c   :  { %361 = vst.msk [vmem:[#allocation2 + $0x30] sm:$0x3] %vm183_vm1, %v3358_v4  ;;  %287 = vmatprep.subr.mxu1 %v3358_v4  ;;  %v250_v34 = vld [vmem:[%s4901_s25 + $0x50] sm:$0xff]  ;;  %v249_v35 = vld [vmem:[%s4901_s25 + $0x48] sm:$0xff]  ;;  %v248_v36 = vld [vmem:[%s4901_s25 + $0x40] sm:$0xff]  ;;  %v280_v58 = vrot.slane %v3532_v28, 2 }
  0x1d   :  { %288 = vmatpush1.msra.mxu1 %v254_v30  ;;  %v247_v37 = vld [vmem:[%s4901_s25 + $0x38] sm:$0xff]  ;;  %v246_v38 = vld [vmem:[%s4901_s25 + $0x30] sm:$0xff]  ;;  %v245_v39 = vld [vmem:[%s4901_s25 + $0x28] sm:$0xff] }
  0x1e   :  { %289 = vmatprep.subr.mxu1 %v3358_v4  ;;  %v244_v40 = vld [vmem:[%s4901_s25 + $0x20] sm:$0xff]  ;;  %v243_v41 = vld [vmem:[%s4901_s25 + $0x18] sm:$0xff]  ;;  %v242_v42 = vld [vmem:[%s4901_s25 + $0x10] sm:$0xff] }
  0x1f   :  { %290 = vmatpush1.msra.mxu1 %v253_v31  ;;  %v241_v43 = vld [vmem:[%s4901_s25 + $0x8] sm:$0xff]  ;;  %v240_v44 = vld [vmem:[%s4901_s25] sm:$0xff]  ;;  %v263_v45 = vld [vmem:[%s4901_s25 + $0xb8] sm:$0xff] }
  0x20   :  { %291 = vmatprep.subr.mxu1 %v3358_v4  ;;  %v262_v46 = vld [vmem:[%s4901_s25 + $0xb0] sm:$0xff]  ;;  %v261_v48 = vld [vmem:[%s4901_s25 + $0xa8] sm:$0xff]  ;;  %v260_v50 = vld [vmem:[%s4901_s25 + $0xa0] sm:$0xff] }
  0x21   :  { %292 = vmatpush1.msra.mxu1 %v252_v32  ;;  %v259_v51 = vld [vmem:[%s4901_s25 + $0x98] sm:$0xff]  ;;  %v258_v52 = vld [vmem:[%s4901_s25 + $0x90] sm:$0xff]  ;;  %v257_v53 = vld [vmem:[%s4901_s25 + $0x88] sm:$0xff] }
  0x22   :  { %293 = vmatprep.subr.mxu1 %v3358_v4  ;;  %v256_v54 = vld [vmem:[%s4901_s25 + $0x80] sm:$0xff]  ;;  %v393_v5 = vld [vmem:[%s4902_s23 + $0x78] sm:$0xff]  ;;  %v392_v6 = vld [vmem:[%s4902_s23 + $0x70] sm:$0xff] }
  0x23   :  { %294 = vmatpush1.msra.mxu1 %v251_v33  ;;  %423 = vmatpush1.msra.mxu0 %v393_v5  ;;  %v391_v7 = vld [vmem:[%s4902_s23 + $0x68] sm:$0xff]  ;;  %v390_v8 = vld [vmem:[%s4902_s23 + $0x60] sm:$0xff]  ;;  %v389_v9 = vld [vmem:[%s4902_s23 + $0x58] sm:$0xff] }
  0x24   :  { %295 = vmatprep.subr.mxu1 %v3358_v4  ;;  %424 = vmatprep.subr.mxu0 %v3358_v4  ;;  %v388_v10 = vld [vmem:[%s4902_s23 + $0x50] sm:$0xff]  ;;  %v387_v11 = vld [vmem:[%s4902_s23 + $0x48] sm:$0xff]  ;;  %v386_v12 = vld [vmem:[%s4902_s23 + $0x40] sm:$0xff] }
  0x25   :  { %296 = vmatpush1.msra.mxu1 %v250_v34  ;;  %425 = vmatpush1.msra.mxu0 %v392_v6  ;;  %v385_v13 = vld [vmem:[%s4902_s23 + $0x38] sm:$0xff]  ;;  %v384_v14 = vld [vmem:[%s4902_s23 + $0x30] sm:$0xff]  ;;  %v395_v32 = vld [vmem:[%s4902_s23 + $0x88] sm:$0xff] }
  0x26   :  { %297 = vmatprep.subr.mxu1 %v3358_v4  ;;  %426 = vmatprep.subr.mxu0 %v3358_v4  ;;  %v396_v29 = vld [vmem:[%s4902_s23 + $0x90] sm:$0xff]  ;;  %v394_v33 = vld [vmem:[%s4902_s23 + $0x80] sm:$0xff]  ;;  %v833_v5 = vld [vmem:[%s4874_s9 + $0xf8] sm:$0xff] }
  0x27   :  { %298 = vmatpush1.msra.mxu1 %v249_v35  ;;  %427 = vmatpush1.msra.mxu0 %v391_v7  ;;  %v681_v6 = vld [vmem:[%s4878_s13 + $0x60] sm:$0xff]  ;;  %v680_v7 = vld [vmem:[%s4878_s13 + $0x58] sm:$0xff] }
  0x28   :  { %299 = vmatprep.subr.mxu1 %v3358_v4  ;;  %428 = vmatprep.subr.mxu0 %v3358_v4 }
  0x29   :  { %300 = vmatpush1.msra.mxu1 %v248_v36  ;;  %429 = vmatpush1.msra.mxu0 %v390_v8  ;;  %v679_v8 = vld [vmem:[%s4878_s13 + $0x50] sm:$0xff] }
  0x2a   :  { %301 = vmatprep.subr.mxu1 %v3358_v4  ;;  %430 = vmatprep.subr.mxu0 %v3358_v4 }
  0x2b   :  { %302 = vmatpush1.msra.mxu1 %v247_v37  ;;  %431 = vmatpush1.msra.mxu0 %v389_v9  ;;  %v377_v37 = vld [vmem:[#allocation2 + $0x30] sm:$0x3]  ;;  %v678_v9 = vld [vmem:[%s4878_s13 + $0x48] sm:$0xff] }
  0x2c   :  { %303 = vmatprep.subr.mxu1 %v3358_v4  ;;  %432 = vmatprep.subr.mxu0 %v3358_v4 }
  0x2d   :  { %304 = vmatpush1.msra.mxu1 %v246_v38  ;;  %433 = vmatpush1.msra.mxu0 %v388_v10  ;;  %v417_v38 = vrot.slane %v377_v37, 2  ;;  %v677_v10 = vld [vmem:[%s4878_s13 + $0x40] sm:$0xff]  ;;  %v809_v37 = vld [vmem:[%s4874_s9 + $0x38] sm:$0xff] }
  0x2e   :  { %305 = vmatprep.subr.mxu1 %v3358_v4  ;;  %434 = vmatprep.subr.mxu0 %v3358_v4 }
  0x2f   :  { %306 = vmatpush1.msra.mxu1 %v245_v39  ;;  %435 = vmatpush1.msra.mxu0 %v387_v11  ;;  %v676_v11 = vld [vmem:[%s4878_s13 + $0x38] sm:$0xff] }
  0x30   :  { %307 = vmatprep.subr.mxu1 %v3358_v4  ;;  %436 = vmatprep.subr.mxu0 %v3358_v4 }
  0x31   :  { %308 = vmatpush1.msra.mxu1 %v244_v40  ;;  %437 = vmatpush1.msra.mxu0 %v386_v12  ;;  %v675_v12 = vld [vmem:[%s4878_s13 + $0x30] sm:$0xff] }
  0x32   :  { %309 = vmatprep.subr.mxu1 %v3358_v4  ;;  %438 = vmatprep.subr.mxu0 %v3358_v4 }
  0x33   :  { %310 = vmatpush1.msra.mxu1 %v243_v41  ;;  %439 = vmatpush1.msra.mxu0 %v385_v13  ;;  %v674_v13 = vld [vmem:[%s4878_s13 + $0x28] sm:$0xff] }
  0x34   :  { %311 = vmatprep.subr.mxu1 %v3358_v4  ;;  %440 = vmatprep.subr.mxu0 %v3358_v4 }
  0x35   :  { %312 = vmatpush1.msra.mxu1 %v242_v42  ;;  %441 = vmatpush1.msra.mxu0 %v384_v14  ;;  %v673_v14 = vld [vmem:[%s4878_s13 + $0x20] sm:$0xff] }
  0x36   :  { %313 = vmatprep.subr.mxu1 %v3358_v4  ;;  %442 = vmatprep.subr.mxu0 %v3358_v4 }
  0x37   :  { %314 = vmatpush1.msra.mxu1 %v241_v43 }
  0x38   :  { %315 = vmatprep.subr.mxu1 %v3358_v4 }
  0x39   :  { %316 = vmatpush1.msra.mxu1 %v240_v44 }
  0x3a   :  { %333 = vmatprep.subr.mxu1 %v3358_v4 }
  0x3b   :  { %334 = vmatpush2.msra.mxu1 %v263_v45 }
  0x3c   :  { %335 = vmatprep.subr.mxu1 %v3358_v4 }
  0x3d   :  { %336 = vmatpush2.msra.mxu1 %v262_v46 }
  0x3e   :  { %337 = vmatprep.subr.mxu1 %v3358_v4 }
  0x3f   :  { %338 = vmatpush2.msra.mxu1 %v261_v48  ;;  %v496_v48 = vld [vmem:[%s4872_s7] sm:$0xff] }
  0x40   :  { %339 = vmatprep.subr.mxu1 %v3358_v4 }
  0x41   :  { %340 = vmatpush2.msra.mxu1 %v260_v50 }
  0x42   :  { %341 = vmatprep.subr.mxu1 %v3358_v4 }
  0x43   :  { %342 = vmatpush2.msra.mxu1 %v259_v51 }
  0x44   :  { %343 = vmatprep.subr.mxu1 %v3358_v4 }
  0x45   :  { %344 = vmatpush2.msra.mxu1 %v258_v52 }
  0x46   :  { %345 = vmatprep.subr.mxu1 %v3358_v4 }
  0x47   :  { %346 = vmatpush2.msra.mxu1 %v257_v53 }
  0x48   :  { %347 = vmatprep.subr.mxu1 %v3358_v4 }
  0x49   :  { %348 = vmatpush2.msra.mxu1 %v256_v54 }
  0xd9   :  { %v163_v17 = vpop.f32.mrf.mxu1 }
  0xda   :  { %v164_v18 = vadd.f32 %v163_v17, %v86_v15  ;;  %v383_v15 = vld [vmem:[%s4902_s23 + $0x28] sm:$0xff]  ;;  %v381_v17 = vld [vmem:[%s4902_s23 + $0x18] sm:$0xff] }
  0xdb   :  { %v165_v19 = vpop.f32.mrf.mxu1  ;;  %443 = vmatpush1.msra.mxu0 %v383_v15  ;;  %v672_v15 = vld [vmem:[%s4878_s13 + $0x18] sm:$0xff] }
  0xdc   :  { %v166_v20 = vadd.f32 %v165_v19, %v90_v16  ;;  %v168_v21 = vmax.f32 %v164_v18, 0.0  ;;  %v382_v16 = vld [vmem:[%s4902_s23 + $0x20] sm:$0xff]  ;;  %444 = vmatprep.subr.mxu0 %v3358_v4  ;;  %v380_v18 = vld [vmem:[%s4902_s23 + $0x10] sm:$0xff]  ;;  %v379_v19 = vld [vmem:[%s4902_s23 + $0x8] sm:$0xff] }
  0xdd   :  { %445 = vmatpush1.msra.mxu0 %v382_v16  ;;  %v671_v16 = vld [vmem:[%s4878_s13 + $0x10] sm:$0xff] }
  0xde   :  { %v169_v22 = vmax.f32 %v166_v20, 0.0  ;;  %446 = vmatprep.subr.mxu0 %v3358_v4  ;;  %v378_v20 = vld [vmem:[%s4902_s23] sm:$0xff] }
  0xdf   :  { %447 = vmatpush1.msra.mxu0 %v381_v17  ;;  %v670_v17 = vld [vmem:[%s4878_s13 + $0x8] sm:$0xff] }
  0xe0   :  { %v172_v23 = vcombine.low %v168_v21, %v169_v22  ;;  %448 = vmatprep.subr.mxu0 %v3358_v4  ;;  %v401_v21 = vld [vmem:[%s4902_s23 + $0xb8] sm:$0xff]  ;;  %v400_v22 = vld [vmem:[%s4902_s23 + $0xb0] sm:$0xff] }
  0xe1   :  { %449 = vmatpush1.msra.mxu0 %v380_v18 }
  0xe2   :  { %2724 = vst.sshfl [vmem:[#allocation3] sm:$0x33 pattern:$0x76325410] %v172_v23  ;;  %450 = vmatprep.subr.mxu0 %v3358_v4  ;;  %v399_v23 = vld [vmem:[%s4902_s23 + $0xa8] sm:$0xff] }
  0xe3   :  { %451 = vmatpush1.msra.mxu0 %v379_v19 }
  0xe4   :  { %452 = vmatprep.subr.mxu0 %v3358_v4 }
  0xe5   :  { %453 = vmatpush1.msra.mxu0 %v378_v20  ;;  %v817_v20 = vld [vmem:[%s4874_s9 + $0x78] sm:$0xff] }
  0xe6   :  { %470 = vmatprep.subr.mxu0 %v3358_v4 }
  0xe7   :  { %471 = vmatpush2.msra.mxu0 %v401_v21  ;;  %v832_v21 = vld [vmem:[%s4874_s9 + $0xf0] sm:$0xff] }
  0xe8   :  { %472 = vmatprep.subr.mxu0 %v3358_v4 }
  0xe9   :  { %v2725_v24 = vld.sshfl [vmem:[#allocation3] sm:$0x3 pattern:$0x76325410]  ;;  %v198_v25 = vld [vmem:[#allocation3 + $0x2] sm:$0x3]  ;;  %473 = vmatpush2.msra.mxu0 %v400_v22 }
  0xea   :  { %194 = vrot.lane.b32.xlu0 %v2725_v24, %s3359_s5  ;;  %199 = vst.msk [vmem:[#allocation4 + $0x4] sm:$0x3] %vm183_vm1, %v198_v25  ;;  %v182_v26 = vld [vmem:[#allocation3] sm:$0x3]  ;;  %474 = vmatprep.subr.mxu0 %v3358_v4  ;;  %v398_v24 = vld [vmem:[%s4902_s23 + $0xa0] sm:$0xff]  ;;  %v816_v22 = vld [vmem:[%s4874_s9 + $0x70] sm:$0xff] }
  0xeb   :  { %184 = vst.msk [vmem:[#allocation4] sm:$0x3] %vm183_vm1, %v182_v26  ;;  %v2726_v27 = vld.sshfl [vmem:[#allocation3 + $0x2] sm:$0x3 pattern:$0x76325410]  ;;  %475 = vmatpush2.msra.mxu0 %v399_v23 }
  0xec   :  { %476 = vmatprep.subr.mxu0 %v3358_v4  ;;  %v2727_v25 = vld [vmem:[%s4903_s1] ss:$0 sm:$0xff]  ;;  %v397_v26 = vld [vmem:[%s4902_s23 + $0x98] sm:$0xff]  ;;  %v831_v23 = vld [vmem:[%s4874_s9 + $0xe8] sm:$0xff] }
  0xed   :  { %477 = vmatpush2.msra.mxu0 %v398_v24  ;;  %v815_v24 = vld [vmem:[%s4874_s9 + $0x68] sm:$0xff] }
  0xee   :  { %209 = vrot.lane.b32.xlu0 %v2726_v27, %s3359_s5  ;;  %478 = vmatprep.subr.mxu0 %v3358_v4 }
  0xef   :  { %479 = vmatpush2.msra.mxu0 %v397_v26  ;;  %v814_v26 = vld [vmem:[%s4874_s9 + $0x60] sm:$0xff] }
  0xf0   :  { %480 = vmatprep.subr.mxu0 %v3358_v4 }
  0xf1   :  { %481 = vmatpush2.msra.mxu0 %v396_v29  ;;  %v828_v29 = vld [vmem:[%s4874_s9 + $0xd0] sm:$0xff] }
  0xf2   :  { %482 = vmatprep.subr.mxu0 %v3358_v4 }
  0xf3   :  { %483 = vmatpush2.msra.mxu0 %v395_v32  ;;  %v811_v32 = vld [vmem:[%s4874_s9 + $0x48] sm:$0xff] }
  0xf4   :  { %484 = vmatprep.subr.mxu0 %v3358_v4 }
  0xf5   :  { %485 = vmatpush2.msra.mxu0 %v394_v33  ;;  %v826_v33 = vld [vmem:[%s4874_s9 + $0xc0] sm:$0xff] }
 0x15c   :  { %v195_v47 = vpop.permute.xlu0 %194 }
 0x15d   :  { %197 = vst.msk [vmem:[#allocation4 + $0x2] sm:$0x3] %vm183_vm1, %v195_v47 }
 0x160   :  { %v210_v49 = vpop.permute.xlu0 %209 }
 0x161   :  { %212 = vst.msk [vmem:[#allocation4 + $0x6] sm:$0x3] %vm183_vm1, %v210_v49  ;;  %v2729_v49 = vld [vmem:[%s4904_s29] ss:$0 sm:$0xff] }
 0x168   :  { %v3632_v55 = vld [vmem:[#allocation4] sm:$0xff] }
 0x169   :  { %v226_v56 = vrot.slane %v3632_v55, 6  ;;  %235 = vst.msk [vmem:[#allocation2 + $0x8] sm:$0xff] %vm234_vm3, %v3632_v55  ;;  %v220_v57 = vrot.slane %v3632_v55, 4 }
 0x16b   :  { %227 = vrot.lane.b32.xlu1 %v226_v56, %s3359_s5  ;;  %223 = vst.msk [vmem:[#allocation2] sm:$0xf0] %vm222_vm4, %v220_v57 }
 0x16c   :  { %225 = vst.msk [vmem:[#allocation2 + $0x28] sm:$0xf] %vm224_vm5, %v220_v57  ;;  %v497_v57 = vld [vmem:[%s4872_s7 + $0x8] sm:$0xff] }
 0x170   :  { %v237_v59 = vld [vmem:[#allocation2 + $0x8] sm:$0xfc] }
 0x171   :  { %359 = vst.msk [vmem:[#allocation2 + $0x8] sm:$0xfc] %vm215_vm2, %v3358_v4  ;;  %v279_v60 = vrot.slane %v237_v59, 2  ;;  %v586_v59 = vld [vmem:[%s4873_s8 + $0x30] sm:$0xff] }
 0x173   :  { %v281_v61 = vsel %vm275_vm6, %v279_v60, %v280_v58  ;;  %v587_v58 = vld [vmem:[%s4873_s8 + $0x38] sm:$0xff]  ;;  %v584_v60 = vld [vmem:[%s4873_s8 + $0x20] sm:$0xff] }
 0x174   :  { %2728 = vmatprep.mubr.msk.f32.mxu1 %vm234_vm3, %v281_v61  ;;  %v583_v61 = vld [vmem:[%s4873_s8 + $0x18] sm:$0xff] }
 0x1dd   :  { %v228_v62 = vpop.permute.xlu1 %227 }
 0x1de   :  { %231 = vst.msk [vmem:[#allocation2] sm:$0xfc] %vm230_vm7, %v228_v62 }
 0x1df   :  { %233 = vst.msk [vmem:[#allocation2 + $0x28] sm:$0x3] %vm232_vm8, %v228_v62  ;;  %v582_v62 = vld [vmem:[%s4873_s8 + $0x10] sm:$0xff] }
 0x1e5   :  { %v236_v63 = vld [vmem:[#allocation2] sm:$0xfc] }
 0x1e6   :  { %v238_v0 = vld [vmem:[#allocation2 + $0x28] sm:$0x3]  ;;  %358 = vst [vmem:[#allocation2] sm:$0xfc] %v3358_v4  ;;  %v276_v1 = vrot.slane %v236_v63, 2 }
 0x1e7   :  { %360 = vst [vmem:[#allocation2 + $0x28] sm:$0x3] %v3358_v4  ;;  %v277_v2 = vrot.slane %v238_v0, 2  ;;  %v581_v63 = vld [vmem:[%s4873_s8 + $0x8] sm:$0xff]  ;;  %v580_v0 = vld [vmem:[%s4873_s8] sm:$0xff] }
 0x1e9   :  { %v278_v3 = vsel %vm275_vm6, %v276_v1, %v277_v2  ;;  %v684_v1 = vld [vmem:[%s4878_s13 + $0x78] sm:$0xff]  ;;  %v683_v2 = vld [vmem:[%s4878_s13 + $0x70] sm:$0xff] }
 0x1ea   :  { %350 = vmatmul.mubr.f32.vlgmr.msra.gmra.mxu1 %v278_v3  ;;  %3115 = vmatprep.subr.mxu0 %v684_v1  ;;  %v682_v3 = vld [vmem:[%s4878_s13 + $0x68] sm:$0xff] }
 0x1eb   :  { %3093 = vmatprep.mubr.msk.f32.mxu1 %vm498_vm10, %v496_v48  ;;  %v804_v48 = vld [vmem:[%s4874_s9 + $0x10] sm:$0xff] }
 0x2aa   :  { %v351_v27 = vpop.f32.mrf.mxu1 }
 0x2ab   :  { %v352_v28 = vadd.f32 %v2727_v25, %v351_v27  ;;  %v830_v25 = vld [vmem:[%s4874_s9 + $0xe0] sm:$0xff]  ;;  %v829_v27 = vld [vmem:[%s4874_s9 + $0xd8] sm:$0xff] }
 0x2ac   :  { %v353_v30 = vpop.f32.mrf.mxu1 }
 0x2ad   :  { %vm355_vm9 = vcmp.gt.f32.partialorder %v352_v28, 0.0  ;;  %v356_v31 = vmul.f32 0.2, %v352_v28  ;;  %v812_v30 = vld [vmem:[%s4874_s9 + $0x50] sm:$0xff] }
 0x2af   :  { %v357_v34 = vsel %vm355_vm9, %v352_v28, %v356_v31  ;;  %v813_v28 = vld [vmem:[%s4874_s9 + $0x58] sm:$0xff]  ;;  %v827_v31 = vld [vmem:[%s4874_s9 + $0xc8] sm:$0xff] }
 0x2b0   :  { %v363_v35 = vrot.slane %v357_v34, 4  ;;  %373 = vst.msk [vmem:[#allocation2 + $0x8] sm:$0xff] %vm234_vm3, %v357_v34  ;;  %v367_v36 = vrot.slane %v357_v34, 6  ;;  %v810_v34 = vld [vmem:[%s4874_s9 + $0x40] sm:$0xff] }
 0x2b2   :  { %365 = vst.msk [vmem:[#allocation2] sm:$0xf0] %vm222_vm4, %v363_v35  ;;  %368 = vrot.lane.b32.xlu1 %v367_v36, %s3359_s5  ;;  %v825_v36 = vld [vmem:[%s4874_s9 + $0xb8] sm:$0xff] }
 0x2b3   :  { %366 = vst.msk [vmem:[#allocation2 + $0x28] sm:$0xf] %vm224_vm5, %v363_v35  ;;  %v669_v35 = vld [vmem:[%s4878_s13] sm:$0xff] }
 0x2b7   :  { %v375_v39 = vld [vmem:[#allocation2 + $0x8] sm:$0xfc] }
 0x2b8   :  { %761 = vst [vmem:[#allocation2 + $0x8] sm:$0xfc] %v3358_v4  ;;  %v416_v40 = vrot.slane %v375_v39, 2  ;;  %v824_v39 = vld [vmem:[%s4874_s9 + $0xb0] sm:$0xff] }
 0x2ba   :  { %v418_v41 = vsel %vm275_vm6, %v416_v40, %v417_v38  ;;  %v849_v38 = vld [vmem:[%s4874_s9 + $0x178] sm:$0xff]  ;;  %v808_v40 = vld [vmem:[%s4874_s9 + $0x30] sm:$0xff] }
 0x2bb   :  { %2730 = vmatprep.mubr.msk.f32.mxu0 %vm234_vm3, %v418_v41  ;;  %v823_v41 = vld [vmem:[%s4874_s9 + $0xa8] sm:$0xff] }
 0x324   :  { %v369_v42 = vpop.permute.xlu1 %368 }
 0x325   :  { %371 = vst.msk [vmem:[#allocation2] sm:$0xfc] %vm230_vm7, %v369_v42 }
 0x326   :  { %372 = vst.msk [vmem:[#allocation2 + $0x28] sm:$0x3] %vm232_vm8, %v369_v42  ;;  %v807_v42 = vld [vmem:[%s4874_s9 + $0x28] sm:$0xff] }
 0x32c   :  { %v374_v43 = vld [vmem:[#allocation2] sm:$0xfc] }
 0x32d   :  { %v376_v44 = vld [vmem:[#allocation2 + $0x28] sm:$0x3]  ;;  %760 = vst [vmem:[#allocation2] sm:$0xfc] %v3358_v4  ;;  %v413_v45 = vrot.slane %v374_v43, 2  ;;  %v822_v43 = vld [vmem:[%s4874_s9 + $0xa0] sm:$0xff] }
 0x32e   :  { %v414_v46 = vrot.slane %v376_v44, 2  ;;  %1045 = vst [vmem:[#allocation2 + $0x28] sm:$0xff] %v3358_v4  ;;  %v806_v44 = vld [vmem:[%s4874_s9 + $0x20] sm:$0xff] }
 0x330   :  { %v415_v47 = vsel %vm275_vm6, %v413_v45, %v414_v46  ;;  %v821_v45 = vld [vmem:[%s4874_s9 + $0x98] sm:$0xff] }
 0x331   :  { %487 = vmatmul.mubr.f32.vlgmr.msra.gmra.mxu0 %v415_v47  ;;  %v805_v46 = vld [vmem:[%s4874_s9 + $0x18] sm:$0xff]  ;;  %v820_v47 = vld [vmem:[%s4874_s9 + $0x90] sm:$0xff] }
 0x332   :  { %3116 = vmatpush3.msra.mxu0 %v684_v1 }
 0x333   :  { %3117 = vmatprep.subr.mxu0 %v683_v2 }
 0x334   :  { %3118 = vmatpush3.msra.mxu0 %v683_v2 }
 0x335   :  { %3119 = vmatprep.subr.mxu0 %v682_v3 }
 0x336   :  { %3120 = vmatpush3.msra.mxu0 %v682_v3 }
 0x337   :  { %3121 = vmatprep.subr.mxu0 %v681_v6 }
 0x338   :  { %3122 = vmatpush3.msra.mxu0 %v681_v6 }
 0x339   :  { %3123 = vmatprep.subr.mxu0 %v680_v7 }
 0x33a   :  { %3124 = vmatpush3.msra.mxu0 %v680_v7 }
 0x33b   :  { %3125 = vmatprep.subr.mxu0 %v679_v8 }
 0x33c   :  { %3126 = vmatpush3.msra.mxu0 %v679_v8 }
 0x33d   :  { %3127 = vmatprep.subr.mxu0 %v678_v9 }
 0x33e   :  { %3128 = vmatpush3.msra.mxu0 %v678_v9 }
 0x33f   :  { %3129 = vmatprep.subr.mxu0 %v677_v10 }
 0x340   :  { %3130 = vmatpush3.msra.mxu0 %v677_v10 }
 0x341   :  { %3131 = vmatprep.subr.mxu0 %v676_v11 }
 0x342   :  { %3132 = vmatpush3.msra.mxu0 %v676_v11 }
 0x343   :  { %3133 = vmatprep.subr.mxu0 %v675_v12 }
 0x344   :  { %3134 = vmatpush3.msra.mxu0 %v675_v12 }
 0x345   :  { %3135 = vmatprep.subr.mxu0 %v674_v13 }
 0x346   :  { %3136 = vmatpush3.msra.mxu0 %v674_v13  ;;  %v843_v13 = vld [vmem:[%s4874_s9 + $0x148] sm:$0xff] }
 0x347   :  { %3137 = vmatprep.subr.mxu0 %v673_v14 }
 0x348   :  { %3138 = vmatpush3.msra.mxu0 %v673_v14 }
 0x349   :  { %3139 = vmatprep.subr.mxu0 %v672_v15 }
 0x34a   :  { %3140 = vmatpush3.msra.mxu0 %v672_v15 }
 0x34b   :  { %3141 = vmatprep.subr.mxu0 %v671_v16 }
 0x34c   :  { %3142 = vmatpush3.msra.mxu0 %v671_v16 }
 0x34d   :  { %3143 = vmatprep.subr.mxu0 %v670_v17 }
 0x34e   :  { %3144 = vmatpush3.msra.mxu0 %v670_v17 }
 0x34f   :  { %3145 = vmatprep.subr.mxu0 %v669_v35 }
 0x350   :  { %3146 = vmatpush3.msra.mxu0 %v669_v35  ;;  %v1098_v35 = vld [vmem:[%s4876_s11 + $0x70] sm:$0xff] }
 0x351   :  { %3150 = vmatprep.subr.mxu0 %v849_v38 }
 0x3f1   :  { %v488_v50 = vpop.f32.mrf.mxu0 }
 0x3f2   :  { %v489_v51 = vadd.f32 %v2729_v49, %v488_v50  ;;  %v819_v49 = vld [vmem:[%s4874_s9 + $0x88] sm:$0xff] }
 0x3f3   :  { %v490_v52 = vpop.f32.mrf.mxu0  ;;  %v803_v50 = vld [vmem:[%s4874_s9 + $0x8] sm:$0xff] }
 0x3f4   :  { %v492_v53 = vadd.f32 %v489_v51, %v3632_v55  ;;  %v585_v55 = vld [vmem:[%s4873_s8 + $0x28] sm:$0xff]  ;;  %v818_v51 = vld [vmem:[%s4874_s9 + $0x80] sm:$0xff] }
 0x3f5   :  { %v802_v52 = vld [vmem:[%s4874_s9] sm:$0xff] }
 0x3f6   :  { %vm493_vm11 = vcmp.gt.f32.partialorder %v492_v53, 0.0  ;;  %v494_v54 = vmul.f32 0.2, %v492_v53 }
 0x3f8   :  { %v495_v56 = vsel %vm493_vm11, %v492_v53, %v494_v54 }
 0x3f9   :  { %3091 = vmatprep.subr.mxu1 %v495_v56 }
 0x3fa   :  { %3092 = vmatpush3.msra.mxu1 %v495_v56 }
 0x3fb   :  { %3094 = vmatmul.mubr.msk.f32.vlgmr.msra.gmra.mxu1 %vm498_vm10, %v497_v57  ;;  %3096 = vmatprep.subr.mxu1 %v587_v58 }
 0x3fc   :  { %3097 = vmatpush3.msra.mxu1 %v587_v58 }
 0x3fd   :  { %3098 = vmatprep.subr.mxu1 %v586_v59 }
 0x3fe   :  { %3099 = vmatpush3.msra.mxu1 %v586_v59 }
 0x3ff   :  { %3100 = vmatprep.subr.mxu1 %v585_v55 }
 0x400   :  { %3101 = vmatpush3.msra.mxu1 %v585_v55  ;;  %v848_v55 = vld [vmem:[%s4874_s9 + $0x170] sm:$0xff] }
 0x401   :  { %3102 = vmatprep.subr.mxu1 %v584_v60 }
 0x402   :  { %3103 = vmatpush3.msra.mxu1 %v584_v60 }
 0x403   :  { %3104 = vmatprep.subr.mxu1 %v583_v61 }
 0x404   :  { %3105 = vmatpush3.msra.mxu1 %v583_v61  ;;  %v847_v61 = vld [vmem:[%s4874_s9 + $0x168] sm:$0xff] }
 0x405   :  { %3106 = vmatprep.subr.mxu1 %v582_v62 }
 0x406   :  { %3107 = vmatpush3.msra.mxu1 %v582_v62  ;;  %v846_v62 = vld [vmem:[%s4874_s9 + $0x160] sm:$0xff] }
 0x407   :  { %3108 = vmatprep.subr.mxu1 %v581_v63 }
 0x408   :  { %3109 = vmatpush3.msra.mxu1 %v581_v63 }
 0x409   :  { %3110 = vmatprep.subr.mxu1 %v580_v0 }
 0x40a   :  { %3111 = vmatpush3.msra.mxu1 %v580_v0  ;;  %v845_v0 = vld [vmem:[%s4874_s9 + $0x158] sm:$0xff] }
 0x40b   :  { %2781 = vmatprep.subr.mxu1 %v833_v5  ;;  %v844_v5 = vld [vmem:[%s4874_s9 + $0x150] sm:$0xff] }
 0x4bb   :  { %v3095_v18 = vpop.f32.mrf.mxu1 }
 0x4bd   :  { %v571_v19 = vpop.f32.mrf.mxu1 }
 0x4be   :  { %3112 = vmatprep.mubr.msk.f32.mxu1 %vm234_vm3, %v571_v19 }
 0x4bf   :  { %3113 = vmatmul.mubr.msk.f32.vlgmr.msra.gmra.mxu1 %vm234_vm3, %v3095_v18  ;;  %v842_v18 = vld [vmem:[%s4874_s9 + $0x140] sm:$0xff] }
 0x4c0   :  { %2782 = vmatpush3.msra.mxu1 %v817_v20 }
 0x4c1   :  { %2783 = vmatprep.subr.mxu1 %v832_v21 }
 0x4c2   :  { %2784 = vmatpush3.msra.mxu1 %v816_v22  ;;  %v841_v22 = vld [vmem:[%s4874_s9 + $0x138] sm:$0xff] }
 0x4c3   :  { %2785 = vmatprep.subr.mxu1 %v831_v23  ;;  %v840_v23 = vld [vmem:[%s4874_s9 + $0x130] sm:$0xff] }
 0x4c4   :  { %2786 = vmatpush3.msra.mxu1 %v815_v24 }
 0x4c5   :  { %2787 = vmatprep.subr.mxu1 %v830_v25  ;;  %v839_v25 = vld [vmem:[%s4874_s9 + $0x128] sm:$0xff] }
 0x4c6   :  { %2788 = vmatpush3.msra.mxu1 %v814_v26  ;;  %v838_v26 = vld [vmem:[%s4874_s9 + $0x120] sm:$0xff] }
 0x4c7   :  { %2789 = vmatprep.subr.mxu1 %v829_v27  ;;  %v837_v27 = vld [vmem:[%s4874_s9 + $0x118] sm:$0xff] }
 0x4c8   :  { %2790 = vmatpush3.msra.mxu1 %v813_v28  ;;  %v836_v28 = vld [vmem:[%s4874_s9 + $0x110] sm:$0xff] }
 0x4c9   :  { %2791 = vmatprep.subr.mxu1 %v828_v29  ;;  %v801_v29 = vld [vmem:[#allocation2 + $0x60] sm:$0x3] }
 0x4ca   :  { %2792 = vmatpush3.msra.mxu1 %v812_v30  ;;  %v835_v30 = vld [vmem:[%s4874_s9 + $0x108] sm:$0xff] }
 0x4cb   :  { %2793 = vmatprep.subr.mxu1 %v827_v31  ;;  %v834_v31 = vld [vmem:[%s4874_s9 + $0x100] sm:$0xff] }
 0x4cc   :  { %2794 = vmatpush3.msra.mxu1 %v811_v32  ;;  %v879_v32 = vrot.slane %v801_v29, 2 }
 0x4cd   :  { %2795 = vmatprep.subr.mxu1 %v826_v33 }
 0x4ce   :  { %2796 = vmatpush3.msra.mxu1 %v810_v34  ;;  %v1099_v34 = vld [vmem:[%s4876_s11 + $0x78] sm:$0xff] }
 0x4cf   :  { %2797 = vmatprep.subr.mxu1 %v825_v36  ;;  %v1097_v36 = vld [vmem:[%s4876_s11 + $0x68] sm:$0xff] }
 0x4d0   :  { %2798 = vmatpush3.msra.mxu1 %v809_v37  ;;  %v1096_v37 = vld [vmem:[%s4876_s11 + $0x60] sm:$0xff] }
 0x4d1   :  { %2799 = vmatprep.subr.mxu1 %v824_v39  ;;  %v1094_v39 = vld [vmem:[%s4876_s11 + $0x50] sm:$0xff] }
 0x4d2   :  { %2800 = vmatpush3.msra.mxu1 %v808_v40  ;;  %v1093_v40 = vld [vmem:[%s4876_s11 + $0x48] sm:$0xff] }
 0x4d3   :  { %2801 = vmatprep.subr.mxu1 %v823_v41  ;;  %v1092_v41 = vld [vmem:[%s4876_s11 + $0x40] sm:$0xff] }
 0x4d4   :  { %2802 = vmatpush3.msra.mxu1 %v807_v42  ;;  %v1091_v42 = vld [vmem:[%s4876_s11 + $0x38] sm:$0xff] }
 0x4d5   :  { %2803 = vmatprep.subr.mxu1 %v822_v43  ;;  %v1090_v43 = vld [vmem:[%s4876_s11 + $0x30] sm:$0xff] }
 0x4d6   :  { %2804 = vmatpush3.msra.mxu1 %v806_v44  ;;  %v1089_v44 = vld [vmem:[%s4876_s11 + $0x28] sm:$0xff] }
 0x4d7   :  { %2805 = vmatprep.subr.mxu1 %v821_v45  ;;  %v1088_v45 = vld [vmem:[%s4876_s11 + $0x20] sm:$0xff] }
 0x4d8   :  { %2806 = vmatpush3.msra.mxu1 %v805_v46  ;;  %v1087_v46 = vld [vmem:[%s4876_s11 + $0x18] sm:$0xff] }
 0x4d9   :  { %2807 = vmatprep.subr.mxu1 %v820_v47  ;;  %v1086_v47 = vld [vmem:[%s4876_s11 + $0x10] sm:$0xff] }
 0x4da   :  { %2808 = vmatpush3.msra.mxu1 %v804_v48  ;;  %v1085_v48 = vld [vmem:[%s4876_s11 + $0x8] sm:$0xff] }
 0x4db   :  { %2809 = vmatprep.subr.mxu1 %v819_v49  ;;  %v1084_v49 = vld [vmem:[%s4876_s11] sm:$0xff] }
 0x4dc   :  { %2810 = vmatpush3.msra.mxu1 %v803_v50  ;;  %v1107_v50 = vld [vmem:[%s4876_s11 + $0xb8] sm:$0xff] }
 0x4dd   :  { %2811 = vmatprep.subr.mxu1 %v818_v51  ;;  %v1106_v51 = vld [vmem:[%s4876_s11 + $0xb0] sm:$0xff] }
 0x4de   :  { %2812 = vmatpush3.msra.mxu1 %v802_v52 }
 0x4df   :  { %1137 = vmatprep.subr.mxu1 %v3358_v4 }
 0x57f   :  { %v3946_v53 = vpop.f32.mrf.mxu1 }
 0x580   :  { %v773_v54 = vrot.slane %v3946_v53, 4  ;;  %v783_v56 = vrot.slane %v3946_v53, 6  ;;  %v873_v7 = vrot.slane %v3946_v53, 2 }
 0x581   :  { %v660_v57 = vpop.f32.mrf.mxu1 }
 0x582   :  { %780 = vst [vmem:[#allocation2 + $0x50] sm:$0xf] %v773_v54  ;;  %790 = vst [vmem:[#allocation2 + $0x58] sm:$0x3] %v783_v56  ;;  %v772_v58 = vrot.slane %v660_v57, 4  ;;  %v782_v59 = vrot.slane %v660_v57, 6  ;;  %3147 = vmatprep.mubr.f32.mxu0 %v660_v57  ;;  %v880_v33 = vsel %vm275_vm6, %v873_v7, %v879_v32 }
 0x583   :  { %791 = vst [vmem:[#allocation2 + $0x10] sm:$0xff] %v660_v57  ;;  %3148 = vmatmul.mubr.f32.vlgmr.msra.gmra.mxu0 %v3946_v53 }
 0x584   :  { %778 = vst [vmem:[#allocation2] sm:$0xf0] %v772_v58  ;;  %v784_v60 = vsel %vm781_vm12, %v782_v59, %v783_v56  ;;  %788 = vst [vmem:[#allocation2 + $0x8] sm:$0xfc] %v782_v59  ;;  %3151 = vmatpush3.msra.mxu0 %v849_v38  ;;  %v774_v63 = vsel %vm771_vm13, %v772_v58, %v773_v54  ;;  %v1095_v38 = vld [vmem:[%s4876_s11 + $0x58] sm:$0xff] }
 0x585   :  { %789 = vst [vmem:[#allocation2 + $0x30] sm:$0xff] %v784_v60  ;;  %3152 = vmatprep.subr.mxu0 %v848_v55  ;;  %v870_v10 = vrot.slane %v784_v60, 2  ;;  %v867_v11 = vrot.slane %v774_v63, 2  ;;  %v1104_v63 = vld [vmem:[%s4876_s11 + $0xa0] sm:$0xff] }
 0x586   :  { %3153 = vmatpush3.msra.mxu0 %v848_v55  ;;  %1046 = vst.msk [vmem:[#allocation2 + $0x30] sm:$0xff] %vm234_vm3, %v3358_v4  ;;  %v1105_v55 = vld [vmem:[%s4876_s11 + $0xa8] sm:$0xff] }
 0x587   :  { %3154 = vmatprep.subr.mxu0 %v847_v61 }
 0x588   :  { %3155 = vmatpush3.msra.mxu0 %v847_v61  ;;  %v2735_v61 = vld [vmem:[%s4875_s10] ss:$0 sm:$0xff] }
 0x589   :  { %v799_v1 = vld [vmem:[#allocation2 + $0x50] sm:$0x3]  ;;  %3156 = vmatprep.subr.mxu0 %v846_v62  ;;  %v800_v3 = vld [vmem:[#allocation2 + $0x58] sm:$0x3] }
 0x58a   :  { %v795_v2 = vld [vmem:[#allocation2 + $0x10] sm:$0xfc]  ;;  %1047 = vst [vmem:[#allocation2 + $0x50] sm:$0x3] %v3358_v4  ;;  %3157 = vmatpush3.msra.mxu0 %v846_v62  ;;  %1048 = vst.msk [vmem:[#allocation2 + $0x58] sm:$0x3] %vm183_vm1, %v3358_v4 }
 0x58b   :  { %1429 = vst [vmem:[#allocation2 + $0x10] sm:$0xfc] %v3358_v4  ;;  %v872_v6 = vrot.slane %v795_v2, 2  ;;  %v793_v8 = vld [vmem:[#allocation2] sm:$0xfc]  ;;  %3158 = vmatprep.subr.mxu0 %v845_v0  ;;  %v877_v16 = vrot.slane %v800_v3, 2 }
 0x58c   :  { %v794_v9 = vld [vmem:[#allocation2 + $0x8] sm:$0xfc]  ;;  %1043 = vst [vmem:[#allocation2] sm:$0xfc] %v3358_v4  ;;  %3159 = vmatpush3.msra.mxu0 %v845_v0  ;;  %v866_v15 = vrot.slane %v793_v8, 2  ;;  %v875_v20 = vrot.slane %v799_v1, 2 }
 0x58d   :  { %1044 = vst.msk [vmem:[#allocation2 + $0x8] sm:$0xfc] %vm215_vm2, %v3358_v4  ;;  %v874_v12 = vsel %vm275_vm6, %v872_v6, %v873_v7  ;;  %v869_v14 = vrot.slane %v794_v9, 2  ;;  %3160 = vmatprep.subr.mxu0 %v844_v5  ;;  %v878_v21 = vsel %vm275_vm6, %v870_v10, %v877_v16  ;;  %v1103_v3 = vld [vmem:[%s4876_s11 + $0x98] sm:$0xff]  ;;  %v1102_v8 = vld [vmem:[%s4876_s11 + $0x90] sm:$0xff]  ;;  %vm1224_vm1 = vcmask 130048  }
 0x58e   :  { %3182 = vmatprep.mubr.f32.mxu0 %v874_v12  ;;  %3161 = vmatpush3.msra.mxu0 %v844_v5  ;;  %v868_v19 = vsel %vm275_vm6, %v866_v15, %v867_v11  ;;  %v876_v24 = vsel %vm275_vm6, %v867_v11, %v875_v20  ;;  %v1101_v11 = vld [vmem:[%s4876_s11 + $0x88] sm:$0xff] }
 0x58f   :  { %v871_v17 = vsel %vm275_vm6, %v869_v14, %v870_v10  ;;  %3162 = vmatprep.subr.mxu0 %v843_v13 }
 0x590   :  { %951 = vmatprep.mubr.f32.mxu1 %v871_v17  ;;  %3163 = vmatpush3.msra.mxu0 %v843_v13  ;;  %v1100_v13 = vld [vmem:[%s4876_s11 + $0x80] sm:$0xff] }
 0x591   :  { %952 = vmatmul.mubr.f32.vlgmr.msra.gmra.mxu1 %v868_v19  ;;  %3164 = vmatprep.subr.mxu0 %v842_v18 }
 0x592   :  { %956 = vmatprep.mubr.f32.mxu1 %v878_v21  ;;  %3165 = vmatpush3.msra.mxu0 %v842_v18 }
 0x593   :  { %3166 = vmatprep.subr.mxu0 %v841_v22  ;;  %1138 = vmatpush1.msra.mxu1 %v1099_v34 }
 0x594   :  { %3167 = vmatpush3.msra.mxu0 %v841_v22  ;;  %1139 = vmatprep.subr.mxu1 %v3358_v4 }
 0x595   :  { %957 = vmatmul.mubr.f32.gmra.mxu1 %v876_v24  ;;  %3168 = vmatprep.subr.mxu0 %v840_v23 }
 0x596   :  { %3169 = vmatpush3.msra.mxu0 %v840_v23  ;;  %1140 = vmatpush1.msra.mxu1 %v1098_v35 }
 0x597   :  { %3170 = vmatprep.subr.mxu0 %v839_v25  ;;  %1141 = vmatprep.subr.mxu1 %v3358_v4 }
 0x598   :  { %3171 = vmatpush3.msra.mxu0 %v839_v25  ;;  %1142 = vmatpush1.msra.mxu1 %v1097_v36 }
 0x599   :  { %3172 = vmatprep.subr.mxu0 %v838_v26  ;;  %1143 = vmatprep.subr.mxu1 %v3358_v4 }
 0x59a   :  { %3173 = vmatpush3.msra.mxu0 %v838_v26  ;;  %1144 = vmatpush1.msra.mxu1 %v1096_v37 }
 0x59b   :  { %3174 = vmatprep.subr.mxu0 %v837_v27  ;;  %1145 = vmatprep.subr.mxu1 %v3358_v4 }
 0x59c   :  { %3175 = vmatpush3.msra.mxu0 %v837_v27  ;;  %1146 = vmatpush1.msra.mxu1 %v1095_v38 }
 0x59d   :  { %3176 = vmatprep.subr.mxu0 %v836_v28  ;;  %1147 = vmatprep.subr.mxu1 %v3358_v4 }
 0x59e   :  { %3177 = vmatpush3.msra.mxu0 %v836_v28  ;;  %1148 = vmatpush1.msra.mxu1 %v1094_v39  ;;  %v1083_v28 = vld [vmem:[#allocation2 + $0x58] sm:$0x3]  ;;  %v1220_v39 = vld [vmem:[%s4879_s14] sm:$0xff] }
 0x59f   :  { %3178 = vmatprep.subr.mxu0 %v835_v30  ;;  %1149 = vmatprep.subr.mxu1 %v3358_v4  ;;  %v1129_v32 = vrot.slane %v1083_v28, 2  ;;  %v1538_v28 = vld [vmem:[%s4881_s16 + $0x138] sm:$0xff] }
 0x5a0   :  { %3179 = vmatpush3.msra.mxu0 %v835_v30  ;;  %1150 = vmatpush1.msra.mxu1 %v1093_v40  ;;  %v2736_v40 = vld [vmem:[%s4877_s12] ss:$0 sm:$0xff] }
 0x5a1   :  { %3180 = vmatprep.subr.mxu0 %v834_v31  ;;  %1151 = vmatprep.subr.mxu1 %v3358_v4 }
 0x5a2   :  { %3181 = vmatpush3.msra.mxu0 %v834_v31  ;;  %1152 = vmatpush1.msra.mxu1 %v1092_v41 }
 0x5a3   :  { %3183 = vmatmul.mubr.f32.vlgmr.msra.gmra.mxu0 %v880_v33  ;;  %1153 = vmatprep.subr.mxu1 %v3358_v4 }
 0x5a4   :  { %1154 = vmatpush1.msra.mxu1 %v1091_v42  ;;  %3189 = vmatprep.mubr.msk.f32.mxu0 %vm1224_vm1, %v1220_v39  ;;  %v1519_v39 = vld [vmem:[%s4881_s16 + $0xa0] sm:$0xff] }
 0x5a5   :  { %1155 = vmatprep.subr.mxu1 %v3358_v4 }
 0x5a6   :  { %1156 = vmatpush1.msra.mxu1 %v1090_v43 }
 0x5a7   :  { %1157 = vmatprep.subr.mxu1 %v3358_v4 }
 0x5a8   :  { %1158 = vmatpush1.msra.mxu1 %v1089_v44 }
 0x5a9   :  { %1159 = vmatprep.subr.mxu1 %v3358_v4 }
 0x5aa   :  { %1160 = vmatpush1.msra.mxu1 %v1088_v45 }
 0x5ab   :  { %1161 = vmatprep.subr.mxu1 %v3358_v4 }
 0x5ac   :  { %1162 = vmatpush1.msra.mxu1 %v1087_v46 }
 0x5ad   :  { %1163 = vmatprep.subr.mxu1 %v3358_v4 }
 0x5ae   :  { %1164 = vmatpush1.msra.mxu1 %v1086_v47 }
 0x5af   :  { %1165 = vmatprep.subr.mxu1 %v3358_v4 }
 0x5b0   :  { %1166 = vmatpush1.msra.mxu1 %v1085_v48 }
 0x5b1   :  { %1167 = vmatprep.subr.mxu1 %v3358_v4 }
 0x5b2   :  { %1168 = vmatpush1.msra.mxu1 %v1084_v49 }
 0x5b3   :  { %1185 = vmatprep.subr.mxu1 %v3358_v4 }
 0x5b4   :  { %1186 = vmatpush2.msra.mxu1 %v1107_v50 }
 0x5b5   :  { %1187 = vmatprep.subr.mxu1 %v3358_v4 }
 0x5b6   :  { %1188 = vmatpush2.msra.mxu1 %v1106_v51 }
 0x5b7   :  { %1189 = vmatprep.subr.mxu1 %v3358_v4 }
 0x5b8   :  { %1190 = vmatpush2.msra.mxu1 %v1105_v55  ;;  %v1326_v55 = vld [vmem:[%s4880_s15 + $0x20] sm:$0xff] }
 0x5b9   :  { %1191 = vmatprep.subr.mxu1 %v3358_v4 }
 0x5ba   :  { %1192 = vmatpush2.msra.mxu1 %v1104_v63  ;;  %v1322_v63 = vld [vmem:[%s4880_s15] sm:$0xff] }
 0x5bb   :  { %1193 = vmatprep.subr.mxu1 %v3358_v4 }
 0x5bc   :  { %1194 = vmatpush2.msra.mxu1 %v1103_v3  ;;  %v1544_v3 = vld [vmem:[%s4881_s16 + $0x168] sm:$0xff] }
 0x5bd   :  { %1195 = vmatprep.subr.mxu1 %v3358_v4 }
 0x5be   :  { %1196 = vmatpush2.msra.mxu1 %v1102_v8  ;;  %v1540_v8 = vld [vmem:[%s4881_s16 + $0x148] sm:$0xff] }
 0x5bf   :  { %1197 = vmatprep.subr.mxu1 %v3358_v4 }
 0x5c0   :  { %1198 = vmatpush2.msra.mxu1 %v1101_v11  ;;  %v1514_v11 = vld [vmem:[%s4881_s16 + $0x78] sm:$0xff] }
 0x5c1   :  { %1199 = vmatprep.subr.mxu1 %v3358_v4 }
 0x5c2   :  { %1200 = vmatpush2.msra.mxu1 %v1100_v13 }
 0x643   :  { %v4086_v57 = vpop.f32.mrf.mxu0 }
 0x645   :  { %v4091_v60 = vpop.f32.mrf.mxu0 }
 0x651   :  { %v2813_v52 = vpop.f32.mrf.mxu1 }
 0x653   :  { %v2814_v53 = vpop.f32.mrf.mxu1 }
 0x654   :  { %v2815_v59 = vadd.f32 %v2814_v53, %v2813_v52  ;;  %v1221_v53 = vld [vmem:[%s4879_s14 + $0x8] sm:$0xff] }
 0x655   :  { %v2816_v54 = vpop.f32.mrf.mxu1 }
 0x656   :  { %v954_v2 = vadd.f32 %v2815_v59, %v2735_v61  ;;  %v1327_v59 = vld [vmem:[%s4880_s15 + $0x28] sm:$0xff] }
 0x657   :  { %v2817_v56 = vpop.f32.mrf.mxu1 }
 0x658   :  { %v2818_v58 = vadd.f32 %v2817_v56, %v2816_v54  ;;  %v1329_v54 = vld [vmem:[%s4880_s15 + $0x38] sm:$0xff]  ;;  %v1222_v56 = vld [vmem:[%s4879_s14 + $0x10] sm:$0xff] }
 0x65a   :  { %v959_v62 = vadd.f32 %v2818_v58, %v2735_v61  ;;  %v1223_v58 = vld [vmem:[%s4879_s14 + $0x18] sm:$0xff]  ;;  %v1324_v61 = vld [vmem:[%s4880_s15 + $0x10] sm:$0xff] }
 0x663   :  { %v3184_v0 = vpop.f32.mrf.mxu0 }
 0x664   :  { %v1034_v1 = vadd.f32 %v3184_v0, %v959_v62  ;;  %v1323_v62 = vld [vmem:[%s4880_s15 + $0x8] sm:$0xff]  ;;  %v1530_v0 = vld [vmem:[%s4881_s16 + $0xf8] sm:$0xff] }
 0x665   :  { %v1028_v5 = vpop.f32.mrf.mxu0 }
 0x666   :  { %vm1038_vm14 = vcmp.gt.f32.partialorder %v1034_v1, 0.0  ;;  %v1040_v6 = vmul.f32 0.2, %v1034_v1  ;;  %v1029_v7 = vadd.f32 %v1028_v5, %v954_v2  ;;  %v1545_v2 = vld [vmem:[%s4881_s16 + $0x170] sm:$0xff]  ;;  %v1543_v5 = vld [vmem:[%s4881_s16 + $0x160] sm:$0xff] }
 0x668   :  { %v1042_v9 = vsel %vm1038_vm14, %v1034_v1, %v1040_v6  ;;  %vm1037_vm15 = vcmp.gt.f32.partialorder %v1029_v7, 0.0  ;;  %v1039_v10 = vmul.f32 0.2, %v1029_v7  ;;  %v1546_v1 = vld [vmem:[%s4881_s16 + $0x178] sm:$0xff] }
 0x669   :  { %v1052_v12 = vrot.slane %v1042_v9, 4  ;;  %1077 = vst.msk [vmem:[#allocation2 + $0x30] sm:$0xff] %vm234_vm3, %v1042_v9  ;;  %v1061_v17 = vrot.slane %v1042_v9, 6  ;;  %3217 = vmatprep.subr.mxu1 %v1546_v1  ;;  %v1542_v6 = vld [vmem:[%s4881_s16 + $0x158] sm:$0xff] }
 0x66a   :  { %v1041_v14 = vsel %vm1037_vm15, %v1029_v7, %v1039_v10  ;;  %v1541_v7 = vld [vmem:[%s4881_s16 + $0x150] sm:$0xff] }
 0x66b   :  { %1059 = vst.msk [vmem:[#allocation2 + $0x50] sm:$0xf] %vm224_vm5, %v1052_v12  ;;  %v1051_v15 = vrot.slane %v1041_v14, 4  ;;  %v1060_v16 = vrot.slane %v1041_v14, 6 }
 0x66c   :  { %1076 = vst.msk [vmem:[#allocation2 + $0x8] sm:$0xff] %vm234_vm3, %v1041_v14  ;;  %v1513_v14 = vld [vmem:[%s4881_s16 + $0x70] sm:$0xff] }
 0x66d   :  { %1057 = vst.msk [vmem:[#allocation2] sm:$0xf0] %vm222_vm4, %v1051_v15  ;;  %1063 = vrot.lane.b32.xlu0 %v1060_v16, %s3359_s5  ;;  %v1062_v18 = vsel %vm781_vm12, %v1060_v16, %v1061_v17  ;;  %v1053_v19 = vsel %vm771_vm13, %v1051_v15, %v1052_v12  ;;  %v1529_v12 = vld [vmem:[%s4881_s16 + $0xf0] sm:$0xff]  ;;  %v1528_v15 = vld [vmem:[%s4881_s16 + $0xe8] sm:$0xff] }
 0x66e   :  { %1065 = vrot.lane.b32.xlu1 %v1062_v18, %s3359_s5  ;;  %1058 = vst.msk [vmem:[#allocation2 + $0x28] sm:$0xff] %vm234_vm3, %v1053_v19  ;;  %v1527_v18 = vld [vmem:[%s4881_s16 + $0xe0] sm:$0xff] }
 0x66f   :  { %v1511_v19 = vld [vmem:[%s4881_s16 + $0x60] sm:$0xff] }
 0x670   :  { %v1081_v20 = vld [vmem:[#allocation2 + $0x30] sm:$0xff] }
 0x671   :  { %1067 = vrot.lane.b32.xlu0 %v1061_v17, %s3359_s5  ;;  %v1125_v23 = vrot.slane %v1081_v20, 2  ;;  %v1512_v17 = vld [vmem:[%s4881_s16 + $0x68] sm:$0xff]  ;;  %v1526_v20 = vld [vmem:[%s4881_s16 + $0xd8] sm:$0xff] }
 0x673   :  { %v1079_v21 = vld [vmem:[#allocation2 + $0x8] sm:$0xfc]  ;;  %v1130_v36 = vsel %vm275_vm6, %v1125_v23, %v1129_v32  ;;  %v1506_v32 = vld [vmem:[%s4881_s16 + $0x38] sm:$0xff] }
 0x674   :  { %v1124_v22 = vrot.slane %v1079_v21, 2  ;;  %1428 = vst [vmem:[#allocation2 + $0x8] sm:$0xfc] %v3358_v4  ;;  %v1510_v21 = vld [vmem:[%s4881_s16 + $0x58] sm:$0xff] }
 0x676   :  { %v1126_v24 = vsel %vm275_vm6, %v1124_v22, %v1125_v23  ;;  %v1525_v22 = vld [vmem:[%s4881_s16 + $0xd0] sm:$0xff] }
 0x677   :  { %2737 = vmatprep.mubr.msk.f32.mxu1 %vm234_vm3, %v1126_v24  ;;  %v1509_v23 = vld [vmem:[%s4881_s16 + $0x50] sm:$0xff]  ;;  %v1524_v24 = vld [vmem:[%s4881_s16 + $0xc8] sm:$0xff] }
 0x6df   :  { %v1064_v25 = vpop.permute.xlu0 %1063 }
 0x6e0   :  { %1072 = vst.msk [vmem:[#allocation2] sm:$0xfc] %vm230_vm7, %v1064_v25  ;;  %v1066_v26 = vpop.permute.xlu1 %1065  ;;  %v1508_v25 = vld [vmem:[%s4881_s16 + $0x48] sm:$0xff] }
 0x6e1   :  { %1074 = vst.msk [vmem:[#allocation2 + $0x28] sm:$0xff] %vm1073_vm0, %v1066_v26  ;;  %v1539_v26 = vld [vmem:[%s4881_s16 + $0x140] sm:$0xff] }
 0x6e3   :  { %v1068_v27 = vpop.permute.xlu0 %1067 }
 0x6e4   :  { %1075 = vst.msk [vmem:[#allocation2 + $0x50] sm:$0x3] %vm232_vm8, %v1068_v27  ;;  %v1523_v27 = vld [vmem:[%s4881_s16 + $0xc0] sm:$0xff] }
 0x6e7   :  { %v1078_v29 = vld [vmem:[#allocation2] sm:$0xfc] }
 0x6e8   :  { %v1080_v30 = vld [vmem:[#allocation2 + $0x28] sm:$0xff]  ;;  %v1121_v31 = vrot.slane %v1078_v29, 2  ;;  %1427 = vst [vmem:[#allocation2] sm:$0xfc] %v3358_v4  ;;  %v1507_v29 = vld [vmem:[%s4881_s16 + $0x40] sm:$0xff] }
 0x6e9   :  { %v1122_v33 = vrot.slane %v1080_v30, 2  ;;  %v1522_v30 = vld [vmem:[%s4881_s16 + $0xb8] sm:$0xff] }
 0x6eb   :  { %v1123_v34 = vsel %vm275_vm6, %v1121_v31, %v1122_v33  ;;  %v1082_v35 = vld [vmem:[#allocation2 + $0x50] sm:$0x3] }
 0x6ec   :  { %1202 = vmatmul.mubr.f32.vlgmr.msra.gmra.mxu1 %v1123_v34  ;;  %v1127_v37 = vrot.slane %v1082_v35, 2  ;;  %v1537_v31 = vld [vmem:[%s4881_s16 + $0x130] sm:$0xff]  ;;  %v1536_v34 = vld [vmem:[%s4881_s16 + $0x128] sm:$0xff] }
 0x6ed   :  { %2738 = vmatprep.mubr.msk.f32.mxu1 %vm234_vm3, %v1130_v36  ;;  %3218 = vmatpush3.msra.mxu1 %v1546_v1  ;;  %v1505_v35 = vld [vmem:[%s4881_s16 + $0x30] sm:$0xff]  ;;  %v1520_v36 = vld [vmem:[%s4881_s16 + $0xa8] sm:$0xff] }
 0x6ee   :  { %v1128_v38 = vsel %vm275_vm6, %v1122_v33, %v1127_v37  ;;  %3219 = vmatprep.subr.mxu1 %v1545_v2  ;;  %v1521_v33 = vld [vmem:[%s4881_s16 + $0xb0] sm:$0xff]  ;;  %v1535_v37 = vld [vmem:[%s4881_s16 + $0x120] sm:$0xff] }
 0x6ef   :  { %3220 = vmatpush3.msra.mxu1 %v1545_v2 }
 0x6f0   :  { %1207 = vmatmul.mubr.f32.gmra.mxu1 %v1128_v38  ;;  %3221 = vmatprep.subr.mxu1 %v1544_v3  ;;  %v1504_v38 = vld [vmem:[%s4881_s16 + $0x28] sm:$0xff] }
 0x6f1   :  { %3222 = vmatpush3.msra.mxu1 %v1544_v3 }
 0x6f2   :  { %3223 = vmatprep.subr.mxu1 %v1543_v5 }
 0x6f3   :  { %3224 = vmatpush3.msra.mxu1 %v1543_v5 }
 0x6f4   :  { %3225 = vmatprep.subr.mxu1 %v1542_v6 }
 0x6f5   :  { %3226 = vmatpush3.msra.mxu1 %v1542_v6 }
 0x6f6   :  { %3227 = vmatprep.subr.mxu1 %v1541_v7 }
 0x6f7   :  { %3228 = vmatpush3.msra.mxu1 %v1541_v7 }
 0x6f8   :  { %3229 = vmatprep.subr.mxu1 %v1540_v8 }
 0x6f9   :  { %3230 = vmatpush3.msra.mxu1 %v1540_v8 }
 0x6fa   :  { %3231 = vmatprep.subr.mxu1 %v1539_v26 }
 0x6fb   :  { %3232 = vmatpush3.msra.mxu1 %v1539_v26 }
 0x6fc   :  { %3233 = vmatprep.subr.mxu1 %v1538_v28 }
 0x6fd   :  { %3234 = vmatpush3.msra.mxu1 %v1538_v28 }
 0x6fe   :  { %3235 = vmatprep.subr.mxu1 %v1537_v31 }
 0x6ff   :  { %3236 = vmatpush3.msra.mxu1 %v1537_v31 }
 0x700   :  { %3237 = vmatprep.subr.mxu1 %v1536_v34 }
 0x701   :  { %3238 = vmatpush3.msra.mxu1 %v1536_v34 }
 0x702   :  { %3239 = vmatprep.subr.mxu1 %v1535_v37 }
 0x703   :  { %3240 = vmatpush3.msra.mxu1 %v1535_v37 }
 0x7ac   :  { %v1203_v41 = vpop.f32.mrf.mxu1 }
 0x7ad   :  { %v1204_v42 = vadd.f32 %v2736_v40, %v1203_v41  ;;  %v1503_v41 = vld [vmem:[%s4881_s16 + $0x20] sm:$0xff] }
 0x7ae   :  { %v1205_v43 = vpop.f32.mrf.mxu1 }
 0x7af   :  { %v1212_v45 = vadd.f32 %v1204_v42, %v4091_v60  ;;  %v1325_v60 = vld [vmem:[%s4880_s15 + $0x18] sm:$0xff]  ;;  %v1533_v43 = vld [vmem:[%s4881_s16 + $0x110] sm:$0xff] }
 0x7b0   :  { %v1208_v44 = vpop.f32.mrf.mxu1  ;;  %v1518_v42 = vld [vmem:[%s4881_s16 + $0x98] sm:$0xff] }
 0x7b1   :  { %v1209_v46 = vadd.f32 %v2736_v40, %v1208_v44  ;;  %v1216_v50 = vmul.f32 0.2, %v1212_v45  ;;  %vm1214_vm4 = vcmp.gt.f32.partialorder %v1212_v45, 0.0  ;;  %v1534_v40 = vld [vmem:[%s4881_s16 + $0x118] sm:$0xff] }
 0x7b2   :  { %v1210_v47 = vpop.f32.mrf.mxu1  ;;  %3241 = vmatprep.subr.mxu1 %v1534_v40  ;;  %v1502_v44 = vld [vmem:[%s4881_s16 + $0x18] sm:$0xff] }
 0x7b3   :  { %v1213_v48 = vadd.f32 %v4086_v57, %v1209_v46  ;;  %v1218_v52 = vsel %vm1214_vm4, %v1212_v45, %v1216_v50  ;;  %v1328_v57 = vld [vmem:[%s4880_s15 + $0x30] sm:$0xff]  ;;  %3242 = vmatpush3.msra.mxu1 %v1534_v40  ;;  %v1532_v46 = vld [vmem:[%s4881_s16 + $0x108] sm:$0xff] }
 0x7b4   :  { %3243 = vmatprep.subr.mxu1 %v1533_v43  ;;  %v1517_v45 = vld [vmem:[%s4881_s16 + $0x90] sm:$0xff] }
 0x7b5   :  { %vm1215_vm2 = vcmp.gt.f32.partialorder %v1213_v48, 0.0  ;;  %v1217_v49 = vmul.f32 0.2, %v1213_v48  ;;  %3244 = vmatpush3.msra.mxu1 %v1533_v43  ;;  %v1501_v47 = vld [vmem:[%s4881_s16 + $0x10] sm:$0xff] }
 0x7b6   :  { %3245 = vmatprep.subr.mxu1 %v1532_v46  ;;  %v4320_v50 = vld [vmem:[#allocation2 + $0xb0] sm:$0x3] }
 0x7b7   :  { %v1219_v51 = vsel %vm1215_vm2, %v1213_v48, %v1217_v49  ;;  %v1516_v48 = vld [vmem:[%s4881_s16 + $0x88] sm:$0xff]  ;;  %3246 = vmatpush3.msra.mxu1 %v1532_v46  ;;  %v1531_v49 = vld [vmem:[%s4881_s16 + $0x100] sm:$0xff]  ;;  %1804 = vst [vmem:[#allocation2 + $0xb0] sm:$0x3] %v3358_v4  ;;  %v1908_v43 = vld [vmem:[%s4883_s18 + $0x170] sm:$0xff] }
 0x7b8   :  { %3185 = vmatprep.subr.mxu0 %v1219_v51  ;;  %3247 = vmatprep.subr.mxu1 %v1531_v49  ;;  %v1907_v46 = vld [vmem:[%s4883_s18 + $0x168] sm:$0xff] }
 0x7b9   :  { %3186 = vmatpush3.msra.mxu0 %v1219_v51  ;;  %v1500_v51 = vld [vmem:[%s4881_s16 + $0x8] sm:$0xff]  ;;  %3248 = vmatpush3.msra.mxu1 %v1531_v49  ;;  %v1906_v49 = vld [vmem:[%s4883_s18 + $0x160] sm:$0xff] }
 0x7ba   :  { %3187 = vmatprep.subr.mxu0 %v1218_v52 }
 0x7bb   :  { %3188 = vmatpush3.msra.mxu0 %v1218_v52  ;;  %v1515_v52 = vld [vmem:[%s4881_s16 + $0x80] sm:$0xff] }
 0x7bc   :  { %3190 = vmatmul.mubr.msk.f32.vlgmr.msra.gmra.mxu0 %vm1224_vm1, %v1221_v53  ;;  %3195 = vmatprep.subr.mxu0 %v1329_v54  ;;  %v1499_v53 = vld [vmem:[%s4881_s16] sm:$0xff] }
 0x7bd   :  { %3192 = vmatprep.mubr.msk.f32.mxu0 %vm1224_vm1, %v1222_v56  ;;  %3196 = vmatpush3.msra.mxu0 %v1329_v54  ;;  %v1893_v54 = vld [vmem:[%s4883_s18 + $0xf8] sm:$0xff] }
 0x7be   :  { %3197 = vmatprep.subr.mxu0 %v1328_v57  ;;  %v1909_v56 = vld [vmem:[%s4883_s18 + $0x178] sm:$0xff] }
 0x7bf   :  { %3198 = vmatpush3.msra.mxu0 %v1328_v57  ;;  %3255 = vmatprep.subr.mxu1 %v1909_v56 }
 0x7c0   :  { %3193 = vmatmul.mubr.msk.f32.gmra.mxu0 %vm1224_vm1, %v1223_v58  ;;  %3199 = vmatprep.subr.mxu0 %v1327_v59 }
 0x7c1   :  { %3200 = vmatpush3.msra.mxu0 %v1327_v59 }
 0x7c2   :  { %3201 = vmatprep.subr.mxu0 %v1326_v55 }
 0x7c3   :  { %3202 = vmatpush3.msra.mxu0 %v1326_v55 }
 0x7c4   :  { %3203 = vmatprep.subr.mxu0 %v1325_v60 }
 0x7c5   :  { %3204 = vmatpush3.msra.mxu0 %v1325_v60 }
 0x7c6   :  { %3205 = vmatprep.subr.mxu0 %v1324_v61 }
 0x7c7   :  { %3206 = vmatpush3.msra.mxu0 %v1324_v61 }
 0x7c8   :  { %3207 = vmatprep.subr.mxu0 %v1323_v62 }
 0x7c9   :  { %3208 = vmatpush3.msra.mxu0 %v1323_v62 }
 0x7ca   :  { %3209 = vmatprep.subr.mxu0 %v1322_v63 }
 0x7cb   :  { %3210 = vmatpush3.msra.mxu0 %v1322_v63 }
 0x7cc   :  { %2855 = vmatprep.subr.mxu0 %v1530_v0 }
 0x87c   :  { %v3191_v9 = vpop.f32.mrf.mxu0 }
 0x87e   :  { %v1303_v10 = vpop.f32.mrf.mxu0 }
 0x87f   :  { %3211 = vmatprep.mubr.msk.f32.mxu0 %vm234_vm3, %v1303_v10 }
 0x880   :  { %v3194_v13 = vpop.f32.mrf.mxu0  ;;  %3212 = vmatmul.mubr.msk.f32.vlgmr.msra.gmra.mxu0 %vm234_vm3, %v3191_v9 }
 0x881   :  { %2856 = vmatpush3.msra.mxu0 %v1514_v11 }
 0x882   :  { %v1313_v16 = vpop.f32.mrf.mxu0  ;;  %2857 = vmatprep.subr.mxu0 %v1529_v12 }
 0x883   :  { %3214 = vmatprep.mubr.msk.f32.mxu0 %vm234_vm3, %v1313_v16  ;;  %2858 = vmatpush3.msra.mxu0 %v1513_v14 }
 0x884   :  { %3215 = vmatmul.mubr.msk.f32.gmra.mxu0 %vm234_vm3, %v3194_v13  ;;  %2859 = vmatprep.subr.mxu0 %v1528_v15 }
 0x885   :  { %2860 = vmatpush3.msra.mxu0 %v1512_v17 }
 0x886   :  { %2861 = vmatprep.subr.mxu0 %v1527_v18 }
 0x887   :  { %2862 = vmatpush3.msra.mxu0 %v1511_v19 }
 0x888   :  { %2863 = vmatprep.subr.mxu0 %v1526_v20 }
 0x889   :  { %2864 = vmatpush3.msra.mxu0 %v1510_v21 }
 0x88a   :  { %2865 = vmatprep.subr.mxu0 %v1525_v22 }
 0x88b   :  { %2866 = vmatpush3.msra.mxu0 %v1509_v23 }
 0x88c   :  { %2867 = vmatprep.subr.mxu0 %v1524_v24 }
 0x88d   :  { %2868 = vmatpush3.msra.mxu0 %v1508_v25 }
 0x88e   :  { %2869 = vmatprep.subr.mxu0 %v1523_v27  ;;  %v1594_v27 = vrot.slane %v4320_v50, 2  ;;  %v1875_v50 = vld [vmem:[%s4883_s18 + $0x68] sm:$0xff] }
 0x88f   :  { %2870 = vmatpush3.msra.mxu0 %v1507_v29 }
 0x890   :  { %2871 = vmatprep.subr.mxu0 %v1522_v30 }
 0x891   :  { %2872 = vmatpush3.msra.mxu0 %v1506_v32 }
 0x892   :  { %2873 = vmatprep.subr.mxu0 %v1521_v33 }
 0x893   :  { %2874 = vmatpush3.msra.mxu0 %v1505_v35 }
 0x894   :  { %2875 = vmatprep.subr.mxu0 %v1520_v36 }
 0x895   :  { %2876 = vmatpush3.msra.mxu0 %v1504_v38 }
 0x896   :  { %2877 = vmatprep.subr.mxu0 %v1519_v39 }
 0x897   :  { %2878 = vmatpush3.msra.mxu0 %v1503_v41 }
 0x898   :  { %2879 = vmatprep.subr.mxu0 %v1518_v42 }
 0x899   :  { %2880 = vmatpush3.msra.mxu0 %v1502_v44  ;;  %v1877_v44 = vld [vmem:[%s4883_s18 + $0x78] sm:$0xff] }
 0x89a   :  { %2881 = vmatprep.subr.mxu0 %v1517_v45  ;;  %v1892_v45 = vld [vmem:[%s4883_s18 + $0xf0] sm:$0xff] }
 0x89b   :  { %2882 = vmatpush3.msra.mxu0 %v1501_v47  ;;  %v1876_v47 = vld [vmem:[%s4883_s18 + $0x70] sm:$0xff] }
 0x89c   :  { %2883 = vmatprep.subr.mxu0 %v1516_v48  ;;  %v1891_v48 = vld [vmem:[%s4883_s18 + $0xe8] sm:$0xff] }
 0x89d   :  { %2884 = vmatpush3.msra.mxu0 %v1500_v51  ;;  %v1890_v51 = vld [vmem:[%s4883_s18 + $0xe0] sm:$0xff] }
 0x89e   :  { %2885 = vmatprep.subr.mxu0 %v1515_v52  ;;  %v1905_v52 = vld [vmem:[%s4883_s18 + $0x158] sm:$0xff] }
 0x89f   :  { %2886 = vmatpush3.msra.mxu0 %v1499_v53  ;;  %v1874_v53 = vld [vmem:[%s4883_s18 + $0x60] sm:$0xff] }
 0x8a0   :  { %2919 = vmatprep.subr.mxu0 %v1893_v54  ;;  %v1889_v54 = vld [vmem:[%s4883_s18 + $0xd8] sm:$0xff] }
 0x940   :  { %v4338_v57 = vpop.f32.mrf.mxu0 }
 0x941   :  { %v1447_v0 = vrot.slane %v4338_v57, 4  ;;  %v1464_v1 = vrot.slane %v4338_v57, 6  ;;  %v1576_v12 = vrot.slane %v4338_v57, 2 }
 0x942   :  { %v4340_v58 = vpop.f32.mrf.mxu0 }
 0x943   :  { %v1446_v59 = vrot.slane %v4340_v58, 4  ;;  %v1463_v55 = vrot.slane %v4340_v58, 6  ;;  %1480 = vst [vmem:[#allocation2 + $0x10] sm:$0xff] %v4340_v58 }
 0x944   :  { %v4345_v60 = vpop.f32.mrf.mxu0 }
 0x945   :  { %1458 = vst [vmem:[#allocation2] sm:$0xf0] %v1446_v59  ;;  %1475 = vst [vmem:[#allocation2 + $0x8] sm:$0xfc] %v1463_v55  ;;  %v1451_v61 = vrot.slane %v4345_v60, 4  ;;  %v1468_v62 = vrot.slane %v4345_v60, 6  ;;  %v1448_v6 = vsel %vm771_vm13, %v1446_v59, %v1447_v0  ;;  %v1465_v7 = vsel %vm781_vm12, %v1463_v55, %v1464_v1 }
 0x946   :  { %v4349_v63 = vpop.f32.mrf.mxu0  ;;  %v1588_v5 = vrot.slane %v4345_v60, 2  ;;  %v1573_v15 = vrot.slane %v1465_v7, 2  ;;  %v1570_v17 = vrot.slane %v1448_v6, 2  ;;  %v1873_v59 = vld [vmem:[%s4883_s18 + $0x58] sm:$0xff]  ;;  %v1888_v55 = vld [vmem:[%s4883_s18 + $0xd0] sm:$0xff]  ;;  %v1870_v6 = vld [vmem:[%s4883_s18 + $0x40] sm:$0xff] }
 0x947   :  { %1462 = vst [vmem:[#allocation2 + $0xa0] sm:$0xf] %v1451_v61  ;;  %1479 = vst [vmem:[#allocation2 + $0xa8] sm:$0x3] %v1468_v62  ;;  %v1466_v2 = vrot.slane %v4349_v63, 6  ;;  %v1449_v3 = vrot.slane %v4349_v63, 4 }
 0x948   :  { %v1582_v10 = vrot.slane %v4349_v63, 2  ;;  %v1595_v34 = vsel %vm275_vm6, %v1588_v5, %v1594_v27  ;;  %v1885_v7 = vld [vmem:[%s4883_s18 + $0xb8] sm:$0xff]  ;;  %v1863_v27 = vld [vmem:[%s4883_s18 + $0x8] sm:$0xff] }
 0x949   :  { %v1467_v9 = vsel %vm781_vm12, %v1464_v1, %v1466_v2  ;;  %v1450_v13 = vsel %vm771_vm13, %v1447_v0, %v1449_v3  ;;  %v1469_v25 = vsel %vm781_vm12, %v1466_v2, %v1468_v62  ;;  %v1452_v31 = vsel %vm771_vm13, %v1449_v3, %v1451_v61  ;;  %v1903_v61 = vld [vmem:[%s4883_s18 + $0x148] sm:$0xff]  ;;  %v1872_v62 = vld [vmem:[%s4883_s18 + $0x50] sm:$0xff]  ;;  %v1902_v1 = vld [vmem:[%s4883_s18 + $0x140] sm:$0xff] }
 0x94a   :  { %v1486_v8 = vld [vmem:[#allocation2 + $0x10] sm:$0xfc]  ;;  %v1589_v18 = vsel %vm275_vm6, %v1582_v10, %v1588_v5  ;;  %v1580_v22 = vrot.slane %v1467_v9, 2  ;;  %v1583_v26 = vsel %vm275_vm6, %v1576_v12, %v1582_v10  ;;  %v1578_v30 = vrot.slane %v1450_v13, 2  ;;  %v1887_v0 = vld [vmem:[%s4883_s18 + $0xc8] sm:$0xff]  ;;  %v1886_v3 = vld [vmem:[%s4883_s18 + $0xc0] sm:$0xff] }
 0x94b   :  { %1792 = vst [vmem:[#allocation2 + $0x10] sm:$0xfc] %v3358_v4  ;;  %v1575_v11 = vrot.slane %v1486_v8, 2  ;;  %v1586_v33 = vrot.slane %v1469_v25, 2  ;;  %v1584_v36 = vrot.slane %v1452_v31, 2  ;;  %v1871_v2 = vld [vmem:[%s4883_s18 + $0x48] sm:$0xff] }
 0x94c   :  { %v1485_v14 = vld [vmem:[#allocation2 + $0x8] sm:$0xfc]  ;;  %v1484_v16 = vld [vmem:[#allocation2] sm:$0xfc]  ;;  %v1581_v32 = vsel %vm275_vm6, %v1573_v15, %v1580_v22  ;;  %v1579_v35 = vsel %vm275_vm6, %v1570_v17, %v1578_v30  ;;  %v1901_v5 = vld [vmem:[%s4883_s18 + $0x138] sm:$0xff] }
 0x94d   :  { %v1577_v19 = vsel %vm275_vm6, %v1575_v11, %v1576_v12  ;;  %v1572_v20 = vrot.slane %v1485_v14, 2  ;;  %1791 = vst [vmem:[#allocation2 + $0x8] sm:$0xfc] %v3358_v4  ;;  %v1569_v21 = vrot.slane %v1484_v16, 2  ;;  %1790 = vst [vmem:[#allocation2] sm:$0xfc] %v3358_v4  ;;  %v1587_v37 = vsel %vm275_vm6, %v1580_v22, %v1586_v33 }
 0x94e   :  { %v1496_v23 = vld [vmem:[#allocation2 + $0xa0] sm:$0x3]  ;;  %v1497_v24 = vld [vmem:[#allocation2 + $0xa8] sm:$0x3]  ;;  %3249 = vmatprep.mubr.f32.mxu1 %v1577_v19  ;;  %v1585_v39 = vsel %vm275_vm6, %v1578_v30, %v1584_v36  ;;  %v1900_v8 = vld [vmem:[%s4883_s18 + $0x130] sm:$0xff] }
 0x94f   :  { %1802 = vst [vmem:[#allocation2 + $0xa0] sm:$0x3] %v3358_v4  ;;  %1803 = vst [vmem:[#allocation2 + $0xa8] sm:$0x3] %v3358_v4  ;;  %v1574_v28 = vsel %vm275_vm6, %v1572_v20, %v1573_v15  ;;  %v1571_v29 = vsel %vm275_vm6, %v1569_v21, %v1570_v17  ;;  %3250 = vmatmul.mubr.f32.vlgmr.msra.gmra.mxu1 %v1583_v26  ;;  %v1592_v38 = vrot.slane %v1497_v24, 2  ;;  %v1590_v40 = vrot.slane %v1496_v23, 2 }
 0x950   :  { %1672 = vmatprep.mubr.f32.mxu0 %v1574_v28  ;;  %3252 = vmatprep.mubr.f32.mxu1 %v1589_v18  ;;  %v1869_v9 = vld [vmem:[%s4883_s18 + $0x38] sm:$0xff]  ;;  %v1884_v10 = vld [vmem:[%s4883_s18 + $0xb0] sm:$0xff]  ;;  %v1899_v11 = vld [vmem:[%s4883_s18 + $0x128] sm:$0xff] }
 0x951   :  { %1673 = vmatmul.mubr.f32.vlgmr.msra.gmra.mxu0 %v1571_v29  ;;  %3256 = vmatpush3.msra.mxu1 %v1909_v56  ;;  %v1593_v41 = vsel %vm275_vm6, %v1586_v33, %v1592_v38  ;;  %v1591_v42 = vsel %vm275_vm6, %v1584_v36, %v1590_v40  ;;  %v1904_v56 = vld [vmem:[%s4883_s18 + $0x150] sm:$0xff]  ;;  %v1883_v13 = vld [vmem:[%s4883_s18 + $0xa8] sm:$0xff]  ;;  %v1898_v14 = vld [vmem:[%s4883_s18 + $0x120] sm:$0xff] }
 0x952   :  { %1677 = vmatprep.mubr.f32.mxu0 %v1581_v32  ;;  %3257 = vmatprep.subr.mxu1 %v1908_v43  ;;  %v1868_v12 = vld [vmem:[%s4883_s18 + $0x30] sm:$0xff]  ;;  %v1867_v15 = vld [vmem:[%s4883_s18 + $0x28] sm:$0xff]  ;;  %v1882_v16 = vld [vmem:[%s4883_s18 + $0xa0] sm:$0xff] }
 0x953   :  { %3253 = vmatmul.mubr.f32.gmra.mxu1 %v1595_v34  ;;  %2920 = vmatpush3.msra.mxu0 %v1877_v44  ;;  %v1897_v17 = vld [vmem:[%s4883_s18 + $0x118] sm:$0xff]  ;;  %v1866_v18 = vld [vmem:[%s4883_s18 + $0x20] sm:$0xff]  ;;  %v1896_v20 = vld [vmem:[%s4883_s18 + $0x110] sm:$0xff] }
 0x954   :  { %3258 = vmatpush3.msra.mxu1 %v1908_v43  ;;  %2921 = vmatprep.subr.mxu0 %v1892_v45  ;;  %v1881_v19 = vld [vmem:[%s4883_s18 + $0x98] sm:$0xff]  ;;  %v1880_v22 = vld [vmem:[%s4883_s18 + $0x90] sm:$0xff]  ;;  %v1895_v23 = vld [vmem:[%s4883_s18 + $0x108] sm:$0xff] }
 0x955   :  { %1678 = vmatmul.mubr.f32.gmra.mxu0 %v1579_v35  ;;  %3259 = vmatprep.subr.mxu1 %v1907_v46  ;;  %v1865_v21 = vld [vmem:[%s4883_s18 + $0x18] sm:$0xff]  ;;  %v1864_v24 = vld [vmem:[%s4883_s18 + $0x10] sm:$0xff]  ;;  %v1879_v25 = vld [vmem:[%s4883_s18 + $0x88] sm:$0xff] }
 0x956   :  { %1682 = vmatprep.mubr.f32.mxu0 %v1587_v37  ;;  %2922 = vmatpush3.msra.mxu0 %v1876_v47  ;;  %v1894_v26 = vld [vmem:[%s4883_s18 + $0x100] sm:$0xff]  ;;  %v4517_v29 = vld [vmem:[#allocation2 + $0xb0] sm:$0x3] }
 0x957   :  { %3260 = vmatpush3.msra.mxu1 %v1907_v46  ;;  %2923 = vmatprep.subr.mxu0 %v1891_v48  ;;  %v1878_v28 = vld [vmem:[%s4883_s18 + $0x80] sm:$0xff]  ;;  %2179 = vst [vmem:[#allocation2 + $0xb0] sm:$0xf] %v3358_v4 }
 0x958   :  { %3261 = vmatprep.subr.mxu1 %v1906_v49  ;;  %2924 = vmatpush3.msra.mxu0 %v1875_v50  ;;  %v1862_v30 = vld [vmem:[%s4883_s18] sm:$0xff] }
 0x959   :  { %1683 = vmatmul.mubr.f32.gmra.mxu0 %v1585_v39  ;;  %3262 = vmatpush3.msra.mxu1 %v1906_v49  ;;  %v2747_v34 = vld [vmem:[%s4882_s17] ss:$0 sm:$0xff] }
 0x95a   :  { %1687 = vmatprep.mubr.f32.mxu0 %v1593_v41  ;;  %2925 = vmatprep.subr.mxu0 %v1890_v51 }
 0x95b   :  { %3263 = vmatprep.subr.mxu1 %v1905_v52  ;;  %2926 = vmatpush3.msra.mxu0 %v1874_v53 }
 0x95c   :  { %3264 = vmatpush3.msra.mxu1 %v1905_v52  ;;  %2927 = vmatprep.subr.mxu0 %v1889_v54 }
 0x95d   :  { %1688 = vmatmul.mubr.f32.gmra.mxu0 %v1591_v42  ;;  %3265 = vmatprep.subr.mxu1 %v1904_v56 }
 0x95e   :  { %2928 = vmatpush3.msra.mxu0 %v1873_v59  ;;  %3266 = vmatpush3.msra.mxu1 %v1904_v56 }
 0x95f   :  { %2929 = vmatprep.subr.mxu0 %v1888_v55  ;;  %3267 = vmatprep.subr.mxu1 %v1903_v61 }
 0x960   :  { %2930 = vmatpush3.msra.mxu0 %v1872_v62  ;;  %3268 = vmatpush3.msra.mxu1 %v1903_v61 }
 0x961   :  { %2931 = vmatprep.subr.mxu0 %v1887_v0  ;;  %3269 = vmatprep.subr.mxu1 %v1902_v1 }
 0x962   :  { %2932 = vmatpush3.msra.mxu0 %v1871_v2  ;;  %3270 = vmatpush3.msra.mxu1 %v1902_v1 }
 0x963   :  { %2933 = vmatprep.subr.mxu0 %v1886_v3  ;;  %3271 = vmatprep.subr.mxu1 %v1901_v5 }
 0x964   :  { %2934 = vmatpush3.msra.mxu0 %v1870_v6  ;;  %3272 = vmatpush3.msra.mxu1 %v1901_v5 }
 0x965   :  { %2935 = vmatprep.subr.mxu0 %v1885_v7  ;;  %3273 = vmatprep.subr.mxu1 %v1900_v8  ;;  %v1957_v7 = vrot.slane %v4517_v29, 2 }
 0x966   :  { %2936 = vmatpush3.msra.mxu0 %v1869_v9  ;;  %3274 = vmatpush3.msra.mxu1 %v1900_v8 }
 0x967   :  { %2937 = vmatprep.subr.mxu0 %v1884_v10  ;;  %3275 = vmatprep.subr.mxu1 %v1899_v11 }
 0x968   :  { %2938 = vmatpush3.msra.mxu0 %v1868_v12  ;;  %3276 = vmatpush3.msra.mxu1 %v1899_v11 }
 0x969   :  { %2939 = vmatprep.subr.mxu0 %v1883_v13  ;;  %3277 = vmatprep.subr.mxu1 %v1898_v14 }
 0x96a   :  { %2940 = vmatpush3.msra.mxu0 %v1867_v15  ;;  %3278 = vmatpush3.msra.mxu1 %v1898_v14 }
 0x96b   :  { %2941 = vmatprep.subr.mxu0 %v1882_v16  ;;  %3279 = vmatprep.subr.mxu1 %v1897_v17 }
 0x96c   :  { %2942 = vmatpush3.msra.mxu0 %v1866_v18  ;;  %3280 = vmatpush3.msra.mxu1 %v1897_v17 }
 0x96d   :  { %2943 = vmatprep.subr.mxu0 %v1881_v19  ;;  %3281 = vmatprep.subr.mxu1 %v1896_v20 }
 0x96e   :  { %2944 = vmatpush3.msra.mxu0 %v1865_v21  ;;  %3282 = vmatpush3.msra.mxu1 %v1896_v20 }
 0x96f   :  { %2945 = vmatprep.subr.mxu0 %v1880_v22  ;;  %3283 = vmatprep.subr.mxu1 %v1895_v23 }
 0x970   :  { %2946 = vmatpush3.msra.mxu0 %v1864_v24  ;;  %3284 = vmatpush3.msra.mxu1 %v1895_v23 }
 0x971   :  { %2947 = vmatprep.subr.mxu0 %v1879_v25  ;;  %3285 = vmatprep.subr.mxu1 %v1894_v26 }
 0x972   :  { %2948 = vmatpush3.msra.mxu0 %v1863_v27  ;;  %3286 = vmatpush3.msra.mxu1 %v1894_v26 }
 0x973   :  { %2949 = vmatprep.subr.mxu0 %v1878_v28 }
 0x974   :  { %2950 = vmatpush3.msra.mxu0 %v1862_v30 }
 0xa0f   :  { %v3251_v32 = vpop.f32.mrf.mxu1 }
 0xa11   :  { %v2887_v31 = vpop.f32.mrf.mxu0  ;;  %v1759_v38 = vpop.f32.mrf.mxu1 }
 0xa13   :  { %v2888_v33 = vpop.f32.mrf.mxu0  ;;  %v3254_v45 = vpop.f32.mrf.mxu1 }
 0xa14   :  { %v2889_v35 = vadd.f32 %v2888_v33, %v2887_v31 }
 0xa15   :  { %v2890_v36 = vpop.f32.mrf.mxu0  ;;  %v1769_v56 = vpop.f32.mrf.mxu1 }
 0xa16   :  { %v1675_v37 = vadd.f32 %v2889_v35, %v2747_v34 }
 0xa17   :  { %v2891_v39 = vpop.f32.mrf.mxu0 }
 0xa18   :  { %v1760_v40 = vadd.f32 %v1759_v38, %v1675_v37  ;;  %v2892_v41 = vadd.f32 %v2891_v39, %v2890_v36 }
 0xa19   :  { %v2893_v42 = vpop.f32.mrf.mxu0 }
 0xa1a   :  { %vm1778_vm3 = vcmp.gt.f32.partialorder %v1760_v40, 0.0  ;;  %v1782_v43 = vmul.f32 0.2, %v1760_v40  ;;  %v1680_v44 = vadd.f32 %v2892_v41, %v2747_v34 }
 0xa1b   :  { %v2894_v46 = vpop.f32.mrf.mxu0 }
 0xa1c   :  { %v1786_v47 = vsel %vm1778_vm3, %v1760_v40, %v1782_v43  ;;  %v1765_v48 = vadd.f32 %v3251_v32, %v1680_v44  ;;  %v2895_v49 = vadd.f32 %v2894_v46, %v2893_v42 }
 0xa1d   :  { %v1809_v50 = vrot.slane %v1786_v47, 4  ;;  %v1826_v51 = vrot.slane %v1786_v47, 6  ;;  %1843 = vst [vmem:[#allocation2 + $0x10] sm:$0xff] %v1786_v47  ;;  %v2896_v52 = vpop.f32.mrf.mxu0 }
 0xa1e   :  { %vm1779_vm5 = vcmp.gt.f32.partialorder %v1765_v48, 0.0  ;;  %v1783_v53 = vmul.f32 0.2, %v1765_v48  ;;  %v1685_v54 = vadd.f32 %v2895_v49, %v2747_v34 }
 0xa1f   :  { %1821 = vst [vmem:[#allocation2] sm:$0xf0] %v1809_v50  ;;  %1838 = vst [vmem:[#allocation2 + $0x8] sm:$0xfc] %v1826_v51  ;;  %v2897_v59 = vpop.f32.mrf.mxu0 }
 0xa20   :  { %v1787_v55 = vsel %vm1779_vm5, %v1765_v48, %v1783_v53  ;;  %v1770_v61 = vadd.f32 %v1769_v56, %v1685_v54  ;;  %v2898_v62 = vadd.f32 %v2897_v59, %v2896_v52  ;;  %v2285_v52 = vld [vmem:[%s4885_s20 + $0x78] sm:$0xff]  ;;  %v2284_v56 = vld [vmem:[%s4885_s20 + $0x70] sm:$0xff] }
 0xa21   :  { %v1810_v0 = vrot.slane %v1787_v55, 4  ;;  %v1827_v1 = vrot.slane %v1787_v55, 6  ;;  %v1939_v11 = vrot.slane %v1787_v55, 2  ;;  %v2333_v53 = vld [vmem:[%s4885_s20 + $0x1f8] sm:$0xff]  ;;  %v2332_v59 = vld [vmem:[%s4885_s20 + $0x1f0] sm:$0xff]  ;;  %v2299_v55 = vld [vmem:[%s4885_s20 + $0xe8] sm:$0xff] }
 0xa22   :  { %vm1780_vm7 = vcmp.gt.f32.partialorder %v1770_v61, 0.0  ;;  %v1784_v2 = vmul.f32 0.2, %v1770_v61  ;;  %v1690_v3 = vadd.f32 %v2898_v62, %v2747_v34  ;;  %3027 = vmatprep.subr.mxu1 %v2333_v53  ;;  %v2317_v54 = vld [vmem:[%s4885_s20 + $0x178] sm:$0xff]  ;;  %v2283_v62 = vld [vmem:[%s4885_s20 + $0x68] sm:$0xff]  ;;  %v2318_v53 = vld [vmem:[%s4885_s20 + $0x180] sm:$0xff] }
 0xa23   :  { %v1811_v5 = vsel %vm771_vm13, %v1809_v50, %v1810_v0  ;;  %v1828_v6 = vsel %vm781_vm12, %v1826_v51, %v1827_v1  ;;  %v2301_v51 = vld [vmem:[%s4885_s20 + $0xf8] sm:$0xff] }
 0xa24   :  { %v1788_v8 = vsel %vm1780_vm7, %v1770_v61, %v1784_v2  ;;  %v1775_v9 = vadd.f32 %v3254_v45, %v1690_v3  ;;  %v1849_v10 = vld [vmem:[#allocation2 + $0x10] sm:$0xfc]  ;;  %v1936_v12 = vrot.slane %v1828_v6, 2  ;;  %v1933_v19 = vrot.slane %v1811_v5, 2  ;;  %2983 = vmatprep.subr.mxu0 %v2301_v51  ;;  %v2315_v2 = vld [vmem:[%s4885_s20 + $0x168] sm:$0xff]  ;;  %v2282_v3 = vld [vmem:[%s4885_s20 + $0x60] sm:$0xff] }
 0xa25   :  { %v1812_v13 = vrot.slane %v1788_v8, 4  ;;  %v1829_v14 = vrot.slane %v1788_v8, 6  ;;  %v1938_v15 = vrot.slane %v1849_v10, 2  ;;  %2159 = vst [vmem:[#allocation2 + $0x10] sm:$0xf0] %v3358_v4  ;;  %v1945_v16 = vrot.slane %v1788_v8, 2 }
 0xa26   :  { %vm1781_vm8 = vcmp.gt.f32.partialorder %v1775_v9, 0.0  ;;  %v1785_v17 = vmul.f32 0.2, %v1775_v9  ;;  %v1848_v18 = vld [vmem:[#allocation2 + $0x8] sm:$0xfc]  ;;  %v2316_v61 = vld [vmem:[%s4885_s20 + $0x170] sm:$0xff] }
 0xa27   :  { %v1940_v20 = vsel %vm275_vm6, %v1938_v15, %v1939_v11  ;;  %v1935_v21 = vrot.slane %v1848_v18, 2  ;;  %2158 = vst [vmem:[#allocation2 + $0x8] sm:$0xf0] %v3358_v4  ;;  %v1847_v22 = vld [vmem:[#allocation2] sm:$0xfc]  ;;  %v1946_v23 = vsel %vm275_vm6, %v1939_v11, %v1945_v16  ;;  %v1830_v24 = vsel %vm781_vm12, %v1827_v1, %v1829_v14  ;;  %v2297_v6 = vld [vmem:[%s4885_s20 + $0xd8] sm:$0xff] }
 0xa28   :  { %v1789_v25 = vsel %vm1781_vm8, %v1775_v9, %v1785_v17  ;;  %3287 = vmatprep.mubr.f32.mxu1 %v1940_v20  ;;  %v1932_v26 = vrot.slane %v1847_v22, 2  ;;  %2157 = vst [vmem:[#allocation2] sm:$0xf0] %v3358_v4  ;;  %v1943_v27 = vrot.slane %v1830_v24, 2  ;;  %v1813_v28 = vsel %vm771_vm13, %v1810_v0, %v1812_v13  ;;  %v2331_v0 = vld [vmem:[%s4885_s20 + $0x1e8] sm:$0xff]  ;;  %v2298_v1 = vld [vmem:[%s4885_s20 + $0xe0] sm:$0xff] }
 0xa29   :  { %v1814_v29 = vrot.slane %v1789_v25, 4  ;;  %v1831_v30 = vrot.slane %v1789_v25, 6  ;;  %v1937_v31 = vsel %vm275_vm6, %v1935_v21, %v1936_v12  ;;  %3288 = vmatmul.mubr.f32.vlgmr.msra.gmra.mxu1 %v1946_v23  ;;  %v1941_v34 = vrot.slane %v1813_v28, 2  ;;  %v2330_v5 = vld [vmem:[%s4885_s20 + $0x1e0] sm:$0xff]  ;;  %v2281_v8 = vld [vmem:[%s4885_s20 + $0x58] sm:$0xff]  ;;  %v2296_v10 = vld [vmem:[%s4885_s20 + $0xd0] sm:$0xff] }
 0xa2a   :  { %2035 = vmatprep.mubr.f32.mxu0 %v1937_v31  ;;  %v1934_v32 = vsel %vm275_vm6, %v1932_v26, %v1933_v19  ;;  %v1944_v33 = vsel %vm275_vm6, %v1936_v12, %v1943_v27  ;;  %v1951_v35 = vrot.slane %v1789_v25, 2  ;;  %3028 = vmatpush3.msra.mxu1 %v2317_v54  ;;  %v2329_v9 = vld [vmem:[%s4885_s20 + $0x1d8] sm:$0xff]  ;;  %v2280_v12 = vld [vmem:[%s4885_s20 + $0x50] sm:$0xff]  ;;  %v2327_v17 = vld [vmem:[%s4885_s20 + $0x1c8] sm:$0xff] }
 0xa2b   :  { %1842 = vst [vmem:[#allocation2 + $0xa8] sm:$0x3] %v1831_v30  ;;  %1825 = vst [vmem:[#allocation2 + $0xa0] sm:$0xf] %v1814_v29  ;;  %2036 = vmatmul.mubr.f32.vlgmr.msra.gmra.mxu0 %v1934_v32  ;;  %v1832_v36 = vsel %vm781_vm12, %v1829_v14, %v1831_v30  ;;  %v1815_v37 = vsel %vm771_vm13, %v1812_v13, %v1814_v29  ;;  %v1942_v41 = vsel %vm275_vm6, %v1933_v19, %v1941_v34  ;;  %v2313_v11 = vld [vmem:[%s4885_s20 + $0x158] sm:$0xff]  ;;  %v2328_v13 = vld [vmem:[%s4885_s20 + $0x1d0] sm:$0xff] }
 0xa2c   :  { %2040 = vmatprep.mubr.f32.mxu0 %v1944_v33  ;;  %v1952_v38 = vsel %vm275_vm6, %v1945_v16, %v1951_v35  ;;  %v1958_v39 = vsel %vm275_vm6, %v1951_v35, %v1957_v7  ;;  %v1949_v40 = vrot.slane %v1832_v36, 2  ;;  %v1947_v43 = vrot.slane %v1815_v37, 2  ;;  %2984 = vmatpush3.msra.mxu0 %v2285_v52  ;;  %v2314_v7 = vld [vmem:[%s4885_s20 + $0x160] sm:$0xff]  ;;  %v2295_v14 = vld [vmem:[%s4885_s20 + $0xc8] sm:$0xff]  ;;  %v2312_v15 = vld [vmem:[%s4885_s20 + $0x150] sm:$0xff] }
 0xa2d   :  { %3290 = vmatprep.mubr.f32.mxu1 %v1952_v38  ;;  %3029 = vmatprep.subr.mxu1 %v2332_v59  ;;  %v2279_v16 = vld [vmem:[%s4885_s20 + $0x48] sm:$0xff]  ;;  %v2294_v18 = vld [vmem:[%s4885_s20 + $0xc0] sm:$0xff]  ;;  %v2293_v22 = vld [vmem:[%s4885_s20 + $0xb8] sm:$0xff] }
 0xa2e   :  { %3291 = vmatmul.mubr.f32.gmra.mxu1 %v1958_v39  ;;  %v1950_v42 = vsel %vm275_vm6, %v1943_v27, %v1949_v40  ;;  %v1948_v44 = vsel %vm275_vm6, %v1941_v34, %v1947_v43  ;;  %v2311_v19 = vld [vmem:[%s4885_s20 + $0x148] sm:$0xff]  ;;  %v2278_v20 = vld [vmem:[%s4885_s20 + $0x40] sm:$0xff]  ;;  %v2277_v24 = vld [vmem:[%s4885_s20 + $0x38] sm:$0xff] }
 0xa2f   :  { %2041 = vmatmul.mubr.f32.gmra.mxu0 %v1942_v41  ;;  %3030 = vmatpush3.msra.mxu1 %v2316_v61  ;;  %v2326_v21 = vld [vmem:[%s4885_s20 + $0x1c0] sm:$0xff]  ;;  %v2325_v25 = vld [vmem:[%s4885_s20 + $0x1b8] sm:$0xff]  ;;  %v2292_v26 = vld [vmem:[%s4885_s20 + $0xb0] sm:$0xff] }
 0xa30   :  { %2045 = vmatprep.mubr.f32.mxu0 %v1950_v42  ;;  %3031 = vmatprep.subr.mxu1 %v2331_v0  ;;  %v2310_v23 = vld [vmem:[%s4885_s20 + $0x140] sm:$0xff]  ;;  %v2309_v27 = vld [vmem:[%s4885_s20 + $0x138] sm:$0xff]  ;;  %v2276_v28 = vld [vmem:[%s4885_s20 + $0x30] sm:$0xff] }
 0xa31   :  { %3032 = vmatpush3.msra.mxu1 %v2315_v2  ;;  %v2324_v29 = vld [vmem:[%s4885_s20 + $0x1b0] sm:$0xff]  ;;  %v2291_v30 = vld [vmem:[%s4885_s20 + $0xa8] sm:$0xff]  ;;  %v2290_v34 = vld [vmem:[%s4885_s20 + $0xa0] sm:$0xff] }
 0xa32   :  { %v1860_v45 = vld [vmem:[#allocation2 + $0xa8] sm:$0x3]  ;;  %v1859_v46 = vld [vmem:[#allocation2 + $0xa0] sm:$0x3]  ;;  %3033 = vmatprep.subr.mxu1 %v2330_v5  ;;  %v2308_v31 = vld [vmem:[%s4885_s20 + $0x130] sm:$0xff] }
 0xa33   :  { %2046 = vmatmul.mubr.f32.gmra.mxu0 %v1948_v44  ;;  %v1955_v47 = vrot.slane %v1860_v45, 2  ;;  %2178 = vst [vmem:[#allocation2 + $0xa8] sm:$0xf] %v3358_v4  ;;  %v1953_v48 = vrot.slane %v1859_v46, 2  ;;  %2177 = vst [vmem:[#allocation2 + $0xa0] sm:$0xf] %v3358_v4  ;;  %3034 = vmatpush3.msra.mxu1 %v2314_v7 }
 0xa34   :  { %v2300_v4 = vld [vmem:[%s4885_s20 + $0xf0] sm:$0xff]  ;;  %3035 = vmatprep.subr.mxu1 %v2329_v9  ;;  %v2275_v32 = vld [vmem:[%s4885_s20 + $0x28] sm:$0xff]  ;;  %v2274_v36 = vld [vmem:[%s4885_s20 + $0x20] sm:$0xff] }
 0xa35   :  { %v1956_v49 = vsel %vm275_vm6, %v1949_v40, %v1955_v47  ;;  %v1954_v50 = vsel %vm275_vm6, %v1947_v43, %v1953_v48  ;;  %2985 = vmatprep.subr.mxu0 %v2300_v4  ;;  %3036 = vmatpush3.msra.mxu1 %v2313_v11  ;;  %v2323_v33 = vld [vmem:[%s4885_s20 + $0x1a8] sm:$0xff]  ;;  %v2322_v37 = vld [vmem:[%s4885_s20 + $0x1a0] sm:$0xff]  ;;  %v2289_v38 = vld [vmem:[%s4885_s20 + $0x98] sm:$0xff] }
 0xa36   :  { %2050 = vmatprep.mubr.f32.mxu0 %v1956_v49  ;;  %2986 = vmatpush3.msra.mxu0 %v2284_v56  ;;  %v2307_v35 = vld [vmem:[%s4885_s20 + $0x128] sm:$0xff]  ;;  %v2306_v39 = vld [vmem:[%s4885_s20 + $0x120] sm:$0xff]  ;;  %v2273_v40 = vld [vmem:[%s4885_s20 + $0x18] sm:$0xff] }
 0xa37   :  { %2051 = vmatmul.mubr.f32.gmra.mxu0 %v1954_v50  ;;  %2987 = vmatprep.subr.mxu0 %v2299_v55  ;;  %v2321_v41 = vld [vmem:[%s4885_s20 + $0x198] sm:$0xff]  ;;  %v2288_v42 = vld [vmem:[%s4885_s20 + $0x90] sm:$0xff]  ;;  %v2287_v46 = vld [vmem:[%s4885_s20 + $0x88] sm:$0xff] }
 0xa38   :  { %2988 = vmatpush3.msra.mxu0 %v2283_v62  ;;  %3037 = vmatprep.subr.mxu1 %v2328_v13  ;;  %v2305_v43 = vld [vmem:[%s4885_s20 + $0x118] sm:$0xff]  ;;  %v2272_v44 = vld [vmem:[%s4885_s20 + $0x10] sm:$0xff]  ;;  %v2271_v48 = vld [vmem:[%s4885_s20 + $0x8] sm:$0xff] }
 0xa39   :  { %2989 = vmatprep.subr.mxu0 %v2298_v1  ;;  %3038 = vmatpush3.msra.mxu1 %v2312_v15  ;;  %v2320_v45 = vld [vmem:[%s4885_s20 + $0x190] sm:$0xff]  ;;  %v2319_v49 = vld [vmem:[%s4885_s20 + $0x188] sm:$0xff]  ;;  %v2286_v50 = vld [vmem:[%s4885_s20 + $0x80] sm:$0xff] }
 0xa3a   :  { %2990 = vmatpush3.msra.mxu0 %v2282_v3  ;;  %3039 = vmatprep.subr.mxu1 %v2327_v17  ;;  %v2304_v47 = vld [vmem:[%s4885_s20 + $0x110] sm:$0xff]  ;;  %v2303_v51 = vld [vmem:[%s4885_s20 + $0x108] sm:$0xff]  ;;  %v2270_v52 = vld [vmem:[%s4885_s20] sm:$0xff] }
 0xa3b   :  { %2991 = vmatprep.subr.mxu0 %v2297_v6  ;;  %3040 = vmatpush3.msra.mxu1 %v2311_v19  ;;  %v2302_v4 = vld [vmem:[%s4885_s20 + $0x100] sm:$0xff]  ;;  %v4745_v54 = vld [vmem:[%s4885_s20 + $0x278] sm:$0xff] }
 0xa3c   :  { %2992 = vmatpush3.msra.mxu0 %v2281_v8  ;;  %3041 = vmatprep.subr.mxu1 %v2326_v21  ;;  %v2748_v61 = vld [vmem:[%s4884_s19] ss:$0 sm:$0xff] }
 0xa3d   :  { %2993 = vmatprep.subr.mxu0 %v2296_v10  ;;  %3042 = vmatpush3.msra.mxu1 %v2310_v23 }
 0xa3e   :  { %2994 = vmatpush3.msra.mxu0 %v2280_v12  ;;  %3043 = vmatprep.subr.mxu1 %v2325_v25 }
 0xa3f   :  { %2995 = vmatprep.subr.mxu0 %v2295_v14  ;;  %3044 = vmatpush3.msra.mxu1 %v2309_v27 }
 0xa40   :  { %2996 = vmatpush3.msra.mxu0 %v2279_v16  ;;  %3045 = vmatprep.subr.mxu1 %v2324_v29 }
 0xa41   :  { %2997 = vmatprep.subr.mxu0 %v2294_v18  ;;  %3046 = vmatpush3.msra.mxu1 %v2308_v31 }
 0xa42   :  { %2998 = vmatpush3.msra.mxu0 %v2278_v20  ;;  %3047 = vmatprep.subr.mxu1 %v2323_v33 }
 0xa43   :  { %2999 = vmatprep.subr.mxu0 %v2293_v22  ;;  %3048 = vmatpush3.msra.mxu1 %v2307_v35 }
 0xa44   :  { %3000 = vmatpush3.msra.mxu0 %v2277_v24  ;;  %3049 = vmatprep.subr.mxu1 %v2322_v37 }
 0xa45   :  { %3001 = vmatprep.subr.mxu0 %v2292_v26  ;;  %3050 = vmatpush3.msra.mxu1 %v2306_v39  ;;  %v2245_v26 = vld [vmem:[#allocation2] sm:$0xf0] }
 0xa46   :  { %3002 = vmatpush3.msra.mxu0 %v2276_v28  ;;  %3051 = vmatprep.subr.mxu1 %v2321_v41 }
 0xa47   :  { %3003 = vmatprep.subr.mxu0 %v2291_v30  ;;  %3052 = vmatpush3.msra.mxu1 %v2305_v43 }
 0xa48   :  { %3004 = vmatpush3.msra.mxu0 %v2275_v32  ;;  %3053 = vmatprep.subr.mxu1 %v2320_v45 }
 0xa49   :  { %3005 = vmatprep.subr.mxu0 %v2290_v34  ;;  %3054 = vmatpush3.msra.mxu1 %v2304_v47  ;;  %v2382_v34 = vrot.slane %v2245_v26, 4 }
 0xa4a   :  { %3006 = vmatpush3.msra.mxu0 %v2274_v36  ;;  %3055 = vmatprep.subr.mxu1 %v2319_v49 }
 0xa4b   :  { %3007 = vmatprep.subr.mxu0 %v2289_v38  ;;  %3056 = vmatpush3.msra.mxu1 %v2303_v51 }
 0xa4c   :  { %3008 = vmatpush3.msra.mxu0 %v2273_v40  ;;  %3057 = vmatprep.subr.mxu1 %v2318_v53 }
 0xa4d   :  { %3009 = vmatprep.subr.mxu0 %v2288_v42  ;;  %3058 = vmatpush3.msra.mxu1 %v2302_v4 }
 0xa4e   :  { %3010 = vmatpush3.msra.mxu0 %v2272_v44 }
 0xa4f   :  { %3011 = vmatprep.subr.mxu0 %v2287_v46 }
 0xa50   :  { %3012 = vmatpush3.msra.mxu0 %v2271_v48 }
 0xa51   :  { %3013 = vmatprep.subr.mxu0 %v2286_v50 }
 0xa52   :  { %3014 = vmatpush3.msra.mxu0 %v2270_v52 }
 0xa53   :  { %3293 = vmatprep.subr.mxu0 %v4745_v54 }
 0xae9   :  { %v3289_v59 = vpop.f32.mrf.mxu1 }
 0xaeb   :  { %v2951_v56 = vpop.f32.mrf.mxu0  ;;  %v2122_v2 = vpop.f32.mrf.mxu1 }
 0xaed   :  { %v2952_v55 = vpop.f32.mrf.mxu0 }
 0xaee   :  { %v2953_v62 = vadd.f32 %v2952_v55, %v2951_v56  ;;  %v3292_v10 = vpop.f32.mrf.mxu1 }
 0xaef   :  { %v2954_v0 = vpop.f32.mrf.mxu0 }
 0xaf0   :  { %v2038_v1 = vadd.f32 %v2953_v62, %v2748_v61  ;;  %v2132_v22 = vpop.f32.mrf.mxu1 }
 0xaf1   :  { %v2955_v3 = vpop.f32.mrf.mxu0 }
 0xaf2   :  { %v2123_v5 = vadd.f32 %v2122_v2, %v2038_v1  ;;  %v2956_v6 = vadd.f32 %v2955_v3, %v2954_v0  ;;  %v2348_v3 = vld [vmem:[%s4885_s20 + $0x270] sm:$0xff] }
 0xaf3   :  { %v2957_v7 = vpop.f32.mrf.mxu0 }
 0xaf4   :  { %v2141_v8 = vadd.f32 %v2123_v5, %v4340_v58  ;;  %v2043_v9 = vadd.f32 %v2956_v6, %v2748_v61 }
 0xaf5   :  { %v2958_v11 = vpop.f32.mrf.mxu0 }
 0xaf6   :  { %vm2145_vm9 = vcmp.gt.f32.partialorder %v2141_v8, 0.0  ;;  %v2149_v12 = vmul.f32 0.2, %v2141_v8  ;;  %v2128_v13 = vadd.f32 %v3289_v59, %v2043_v9  ;;  %v2959_v14 = vadd.f32 %v2958_v11, %v2957_v7 }
 0xaf7   :  { %v2960_v15 = vpop.f32.mrf.mxu0 }
 0xaf8   :  { %v2153_v16 = vsel %vm2145_vm9, %v2141_v8, %v2149_v12  ;;  %v2142_v17 = vadd.f32 %v4338_v57, %v2128_v13  ;;  %v2048_v18 = vadd.f32 %v2959_v14, %v2748_v61  ;;  %v2347_v12 = vld [vmem:[%s4885_s20 + $0x268] sm:$0xff] }
 0xaf9   :  { %2182 = vst [vmem:[#allocation2 + $0x28] sm:$0xff] %v2153_v16  ;;  %v2190_v19 = vrot.slane %v2153_v16, 2  ;;  %v2207_v20 = vrot.slane %v2153_v16, 4  ;;  %v2224_v21 = vrot.slane %v2153_v16, 6  ;;  %2241 = vst [vmem:[#allocation2 + $0x20] sm:$0xff] %v2153_v16  ;;  %v2961_v23 = vpop.f32.mrf.mxu0 }
 0xafa   :  { %vm2146_vm10 = vcmp.gt.f32.partialorder %v2142_v17, 0.0  ;;  %v2150_v58 = vmul.f32 0.2, %v2142_v17  ;;  %v2133_v24 = vadd.f32 %v2132_v22, %v2048_v18  ;;  %v2962_v25 = vadd.f32 %v2961_v23, %v2960_v15  ;;  %v2346_v15 = vld [vmem:[%s4885_s20 + $0x260] sm:$0xff] }
 0xafb   :  { %2219 = vst [vmem:[#allocation2 + $0x10] sm:$0xf0] %v2207_v20  ;;  %2236 = vst [vmem:[#allocation2 + $0x18] sm:$0xfc] %v2224_v21  ;;  %v2384_v46 = vsel %vm771_vm13, %v2382_v34, %v2207_v20 }
 0xafc   :  { %2202 = vst [vmem:[#allocation2 + $0x8] sm:$0xc0] %v2190_v19  ;;  %v2154_v27 = vsel %vm2146_vm10, %v2142_v17, %v2150_v58  ;;  %v2143_v28 = vadd.f32 %v2133_v24, %v4349_v63  ;;  %v2053_v57 = vadd.f32 %v2962_v25, %v2748_v61 }
 0xafd   :  { %2183 = vst [vmem:[#allocation2 + $0x50] sm:$0xff] %v2154_v27  ;;  %v2191_v29 = vrot.slane %v2154_v27, 2  ;;  %v4754_v30 = vrot.slane %v2154_v27, 4  ;;  %v2225_v31 = vrot.slane %v2154_v27, 6 }
 0xafe   :  { %vm2147_vm11 = vcmp.gt.f32.partialorder %v2143_v28, 0.0  ;;  %v2151_v32 = vmul.f32 0.2, %v2143_v28  ;;  %v2138_v33 = vadd.f32 %v3292_v10, %v2053_v57 }
 0xaff   :  { %v2192_v35 = vsel %vm275_vm6, %v2190_v19, %v2191_v29  ;;  %v4759_v36 = vsel %vm771_vm13, %v2207_v20, %v4754_v30  ;;  %v2226_v37 = vsel %vm781_vm12, %v2224_v21, %v2225_v31  ;;  %v2345_v19 = vld [vmem:[%s4885_s20 + $0x258] sm:$0xff]  ;;  %v2344_v21 = vld [vmem:[%s4885_s20 + $0x250] sm:$0xff] }
 0xb00   :  { %2203 = vst [vmem:[#allocation2 + $0x30] sm:$0xff] %v2192_v35  ;;  %v2155_v63 = vsel %vm2147_vm11, %v2143_v28, %v2151_v32  ;;  %v2144_v38 = vadd.f32 %v4345_v60, %v2138_v33  ;;  %v2386_v39 = vrot.slane %v2192_v35, 4  ;;  %v2392_v43 = vrot.slane %v2226_v37, 4  ;;  %v2249_v22 = vld [vmem:[#allocation2 + $0x20] sm:$0xf0]  ;;  %v2343_v32 = vld [vmem:[%s4885_s20 + $0x248] sm:$0xff] }
 0xb01   :  { %v2193_v40 = vrot.slane %v2155_v63, 2  ;;  %v4763_v41 = vrot.slane %v2155_v63, 4  ;;  %v2227_v42 = vrot.slane %v2155_v63, 6  ;;  %v2389_v47 = vrot.slane %v4759_v36, 4  ;;  %v2341_v63 = vld [vmem:[%s4885_s20 + $0x238] sm:$0xff] }
 0xb02   :  { %vm2148_vm14 = vcmp.gt.f32.partialorder %v2144_v38, 0.0  ;;  %v2152_v44 = vmul.f32 0.2, %v2144_v38  ;;  %v2248_v51 = vld [vmem:[#allocation2 + $0x18] sm:$0xf0]  ;;  %v2394_v33 = vrot.slane %v2249_v22, 4 }
 0xb03   :  { %v2246_v45 = vld [vmem:[#allocation2 + $0x8] sm:$0xf0]  ;;  %v2194_v48 = vsel %vm275_vm6, %v2191_v29, %v2193_v40  ;;  %v4771_v49 = vsel %vm771_vm13, %v4754_v30, %v4763_v41  ;;  %v2228_v60 = vsel %vm781_vm12, %v2225_v31, %v2227_v42  ;;  %v2247_v52 = vld [vmem:[#allocation2 + $0x10] sm:$0xf0]  ;;  %v2391_v4 = vrot.slane %v2248_v51, 4 }
 0xb04   :  { %v2385_v50 = vrot.slane %v2246_v45, 4  ;;  %2204 = vst [vmem:[#allocation2 + $0x58] sm:$0xff] %v2194_v48  ;;  %2221 = vst [vmem:[#allocation2 + $0x60] sm:$0xff] %v4771_v49  ;;  %v2156_v53 = vsel %vm2148_vm14, %v2144_v38, %v2152_v44  ;;  %v2388_v56 = vrot.slane %v2247_v52, 4  ;;  %v2399_v59 = vrot.slane %v2194_v48, 4  ;;  %v2340_v38 = vld [vmem:[%s4885_s20 + $0x230] sm:$0xff] }
 0xb05   :  { %2185 = vst [vmem:[#allocation2 + $0xa0] sm:$0xff] %v2156_v53  ;;  %v2195_v55 = vrot.slane %v2156_v53, 2  ;;  %v4775_v61 = vrot.slane %v2156_v53, 4  ;;  %v2229_v62 = vrot.slane %v2156_v53, 6  ;;  %v2393_v1 = vsel %vm771_vm13, %v2391_v4, %v2392_v43  ;;  %v2269_v44 = vld [vmem:[#allocation2 + $0xc0] sm:$0xf] }
 0xb06   :  { %v2387_v0 = vsel %vm771_vm13, %v2385_v50, %v2386_v39  ;;  %v2390_v2 = vsel %vm771_vm13, %v2388_v56, %v2389_v47  ;;  %v2400_v5 = vsel %vm771_vm13, %v2386_v39, %v2399_v59  ;;  %v2403_v6 = vrot.slane %v2228_v60, 4  ;;  %2596 = vmatprep.mubr.f32.mxu1 %v2393_v1  ;;  %v2339_v39 = vld [vmem:[%s4885_s20 + $0x228] sm:$0xff] }
 0xb07   :  { %2511 = vmatprep.mubr.f32.mxu0 %v2387_v0  ;;  %v2196_v7 = vsel %vm275_vm6, %v2193_v40, %v2195_v55  ;;  %2206 = vst [vmem:[#allocation2 + $0xa8] sm:$0x3f] %v2195_v55  ;;  %v4788_v8 = vsel %vm771_vm13, %v4763_v41, %v4775_v61  ;;  %2223 = vst [vmem:[#allocation2 + $0xb0] sm:$0xf] %v4775_v61  ;;  %v2230_v9 = vsel %vm781_vm12, %v2227_v42, %v2229_v62  ;;  %v2337_v40 = vld [vmem:[%s4885_s20 + $0x218] sm:$0xff]  ;;  %v2335_v42 = vld [vmem:[%s4885_s20 + $0x208] sm:$0xff] }
 0xb08   :  { %2240 = vst [vmem:[#allocation2 + $0xb8] sm:$0x3] %v2229_v62  ;;  %2512 = vmatmul.mubr.f32.vlgmr.msra.gmra.mxu0 %v2384_v46  ;;  %v2401_v10 = vrot.slane %v4771_v49, 4  ;;  %2597 = vmatmul.mubr.f32.vlgmr.msra.gmra.mxu1 %v2390_v2  ;;  %v2404_v11 = vsel %vm771_vm13, %v2392_v43, %v2403_v6  ;;  %v2409_v13 = vrot.slane %v2196_v7, 4  ;;  %v2413_v14 = vrot.slane %v2230_v9, 4  ;;  %v2334_v43 = vld [vmem:[%s4885_s20 + $0x200] sm:$0xff] }
 0xb09   :  { %3294 = vmatpush3.msra.mxu0 %v4745_v54  ;;  %2516 = vmatprep.mubr.f32.mxu0 %v2400_v5  ;;  %v2411_v54 = vrot.slane %v4788_v8, 4  ;;  %v2396_v37 = vsel %vm771_vm13, %v2394_v33, %v4754_v30  ;;  %v2338_v30 = vld [vmem:[%s4885_s20 + $0x220] sm:$0xff]  ;;  %v2425_v45 = vrot.slane %v2269_v44, 4  ;;  %vm2702_vm6 = vcmask 392192  }
 0xb0a   :  { %3295 = vmatprep.subr.mxu0 %v2348_v3  ;;  %2601 = vmatprep.mubr.f32.mxu1 %v2404_v11  ;;  %v2410_v16 = vsel %vm771_vm13, %v2399_v59, %v2409_v13  ;;  %v2402_v17 = vsel %vm771_vm13, %v2389_v47, %v2401_v10  ;;  %v2414_v18 = vsel %vm771_vm13, %v2403_v6, %v2413_v14 }
 0xb0b   :  { %3296 = vmatpush3.msra.mxu0 %v2348_v3  ;;  %v2412_v23 = vsel %vm771_vm13, %v2401_v10, %v2411_v54  ;;  %v2426_v46 = vsel %vm771_vm13, %v4775_v61, %v2425_v45  ;;  %v2749_v61 = vld [vmem:[%s4886_s21] ss:$0 sm:$0xff]  ;;  %s3360_s21 = smov [#allocation5]  }
 0xb0c   :  { %3297 = vmatprep.subr.mxu0 %v2347_v12  ;;  %2517 = vmatmul.mubr.f32.gmra.mxu0 %v4759_v36  ;;  %v2265_v20 = vld [vmem:[#allocation2 + $0xa0] sm:$0xf]  ;;  %s2712_s11 = sshll.u32 %s3360_s21, 4  ;;  %s2713_s11 = int_to_ptr.vmem [resolvable:$true] %s2712_s11 }
 0xb0d   :  { %2602 = vmatmul.mubr.f32.gmra.mxu1 %v2402_v17  ;;  %3298 = vmatpush3.msra.mxu0 %v2347_v12  ;;  %v2417_v28 = vrot.slane %v2265_v20, 4  ;;  %v2342_v36 = vld [vmem:[%s4885_s20 + $0x240] sm:$0xff]  ;;  %s3336_s17 = scalar_lea.vmem %s2713_s11, 512  ;;  %p3341_p1 = scmp.lt.s32.totalorder %s2713_s11, %s2713_s11 }
 0xb0e   :  { %3299 = vmatprep.subr.mxu0 %v2346_v15  ;;  %2521 = vmatprep.mubr.f32.mxu0 %v2410_v16  ;;  %v2266_v58 = vld [vmem:[#allocation2 + $0xa8] sm:$0xf]  ;;  %v2267_v25 = vld [vmem:[#allocation2 + $0xb0] sm:$0xf]  ;;  %p3337_p0 = scmp.ne.s32.totalorder %s2713_s11, %s3336_s17  ;;  %p3342_p2 = scmp.lt.s32.totalorder %s3336_s17, %s3336_s17 }
 0xb0f   :  { %3300 = vmatpush3.msra.mxu0 %v2346_v15  ;;  %2606 = vmatprep.mubr.f32.mxu1 %v2414_v18  ;;  %v2268_v24 = vld [vmem:[#allocation2 + $0xb8] sm:$0xf]  ;;  %v2419_v26 = vrot.slane %v2266_v58, 4  ;;  %v2421_v57 = vrot.slane %v2267_v25, 4  ;;  %v2418_v35 = vsel %vm771_vm13, %v4763_v41, %v2417_v28  ;;  %v2336_v41 = vld [vmem:[%s4885_s20 + $0x210] sm:$0xff] }
 0xb10   :  { %3301 = vmatprep.subr.mxu0 %v2345_v19  ;;  %2522 = vmatmul.mubr.f32.gmra.mxu0 %v4771_v49  ;;  %v2423_v27 = vrot.slane %v2268_v24, 4  ;;  %p3343_p3 = por %p3342_p2, %p3341_p1 }
 0xb11   :  { %2607 = vmatmul.mubr.f32.gmra.mxu1 %v2412_v23  ;;  %3302 = vmatpush3.msra.mxu0 %v2345_v19  ;;  %v2420_v29 = vsel %vm771_vm13, %v2409_v13, %v2419_v26  ;;  %v2422_v34 = vsel %vm771_vm13, %v2411_v54, %v2421_v57 }
 0xb12   :  { %v2424_v31 = vsel %vm771_vm13, %v2413_v14, %v2423_v27  ;;  %3303 = vmatprep.subr.mxu0 %v2344_v21  ;;  %2526 = vmatprep.mubr.f32.mxu0 %v2420_v29  ;;  %p3344_p4 = pnand %p3343_p3, %p3337_p0 }
 0xb13   :  { %2611 = vmatprep.mubr.f32.mxu1 %v2424_v31  ;;  %3304 = vmatpush3.msra.mxu0 %v2344_v21 }
 0xb14   :  { %3305 = vmatprep.subr.mxu0 %v2343_v32  ;;  %2527 = vmatmul.mubr.f32.gmra.mxu0 %v2418_v35 }
 0xb15   :  { %2612 = vmatmul.mubr.f32.gmra.mxu1 %v2422_v34  ;;  %3306 = vmatpush3.msra.mxu0 %v2343_v32 }
 0xb16   :  { %3307 = vmatprep.subr.mxu0 %v2342_v36  ;;  %3325 = vmatprep.mubr.f32.mxu0 %v2396_v37 }
 0xb17   :  { %3308 = vmatpush3.msra.mxu0 %v2342_v36 }
 0xb18   :  { %3309 = vmatprep.subr.mxu0 %v2341_v63 }
 0xb19   :  { %3310 = vmatpush3.msra.mxu0 %v2341_v63 }
 0xb1a   :  { %3311 = vmatprep.subr.mxu0 %v2340_v38 }
 0xb1b   :  { %3312 = vmatpush3.msra.mxu0 %v2340_v38 }
 0xb1c   :  { %3313 = vmatprep.subr.mxu0 %v2339_v39 }
 0xb1d   :  { %3314 = vmatpush3.msra.mxu0 %v2339_v39 }
 0xb1e   :  { %3315 = vmatprep.subr.mxu0 %v2338_v30 }
 0xb1f   :  { %3316 = vmatpush3.msra.mxu0 %v2338_v30 }
 0xb20   :  { %3317 = vmatprep.subr.mxu0 %v2337_v40 }
 0xb21   :  { %3318 = vmatpush3.msra.mxu0 %v2337_v40 }
 0xb22   :  { %3319 = vmatprep.subr.mxu0 %v2336_v41 }
 0xb23   :  { %3320 = vmatpush3.msra.mxu0 %v2336_v41 }
 0xb24   :  { %3321 = vmatprep.subr.mxu0 %v2335_v42 }
 0xb25   :  { %3322 = vmatpush3.msra.mxu0 %v2335_v42 }
 0xb26   :  { %3323 = vmatprep.subr.mxu0 %v2334_v43 }
 0xb27   :  { %3324 = vmatpush3.msra.mxu0 %v2334_v43 }
 0xb28   :  { %3326 = vmatmul.mubr.f32.vlgmr.msra.gmra.mxu0 %v4771_v49 }
 0xb29   :  { %3328 = vmatprep.mubr.f32.mxu0 %v4788_v8 }
 0xb2c   :  { %3329 = vmatmul.mubr.f32.gmra.mxu0 %v2426_v46 }
 0xbc8   :  { %v3015_v47 = vpop.f32.mrf.mxu0  ;;  %v3059_v60 = vpop.f32.mrf.mxu1 }
 0xbca   :  { %v3016_v48 = vpop.f32.mrf.mxu0  ;;  %v3060_v51 = vpop.f32.mrf.mxu1 }
 0xbcb   :  { %v3017_v2 = vadd.f32 %v3016_v48, %v3015_v47  ;;  %v3061_v11 = vadd.f32 %v3060_v51, %v3059_v60 }
 0xbcc   :  { %v3018_v50 = vpop.f32.mrf.mxu0 }
 0xbcd   :  { %v3062_v53 = vpop.f32.mrf.mxu1  ;;  %v2514_v7 = vadd.f32 %v3017_v2, %v2749_v61 }
 0xbce   :  { %v3019_v52 = vpop.f32.mrf.mxu0 }
 0xbcf   :  { %v3063_v56 = vpop.f32.mrf.mxu1  ;;  %v3020_v49 = vadd.f32 %v3019_v52, %v3018_v50  ;;  %v2599_v17 = vadd.f32 %v3061_v11, %v2514_v7 }
 0xbd0   :  { %v3021_v4 = vpop.f32.mrf.mxu0  ;;  %v3064_v8 = vadd.f32 %v3063_v56, %v3062_v53 }
 0xbd1   :  { %v3065_v55 = vpop.f32.mrf.mxu1  ;;  %v2519_v5 = vadd.f32 %v3020_v49, %v2749_v61 }
 0xbd2   :  { %v3022_v59 = vpop.f32.mrf.mxu0 }
 0xbd3   :  { %v3066_v0 = vpop.f32.mrf.mxu1  ;;  %v3023_v9 = vadd.f32 %v3022_v59, %v3021_v4  ;;  %v2604_v13 = vadd.f32 %v3064_v8, %v2519_v5 }
 0xbd4   :  { %v3024_v62 = vpop.f32.mrf.mxu0  ;;  %v3067_v19 = vadd.f32 %v3066_v0, %v3065_v55 }
 0xbd5   :  { %v3068_v3 = vpop.f32.mrf.mxu1  ;;  %v2524_v15 = vadd.f32 %v3023_v9, %v2749_v61 }
 0xbd6   :  { %v3025_v1 = vpop.f32.mrf.mxu0 }
 0xbd7   :  { %v3026_v6 = vadd.f32 %v3025_v1, %v3024_v62  ;;  %v3069_v10 = vpop.f32.mrf.mxu1  ;;  %v2609_v58 = vadd.f32 %v3067_v19, %v2524_v15 }
 0xbd8   :  { %v3070_v16 = vadd.f32 %v3069_v10, %v3068_v3 }
 0xbd9   :  { %v2529_v12 = vadd.f32 %v3026_v6, %v2749_v61 }
 0xbdb   :  { %v2614_v21 = vadd.f32 %v3070_v16, %v2529_v12 }
 0xbe8   :  { %v3327_v14 = vpop.f32.mrf.mxu0 }
 0xbe9   :  { %v2689_v54 = vadd.f32 %v3327_v14, %v2604_v13 }
 0xbea   :  { %v2683_v18 = vpop.f32.mrf.mxu0 }
 0xbeb   :  { %2704 = vst.msk [vmem:[#allocation5 + $0x8] sm:$0xff] %vm2702_vm6, %v2689_v54  ;;  %v2684_v20 = vadd.f32 %v2683_v18, %v2599_v17 }
 0xbec   :  { %v3330_v22 = vpop.f32.mrf.mxu0 }
 0xbed   :  { %2703 = vst.msk [vmem:[#allocation5] sm:$0xff] %vm2702_vm6, %v2684_v20  ;;  %v2699_v23 = vadd.f32 %v3330_v22, %v2614_v21 }
 0xbee   :  { %v2693_v24 = vpop.f32.mrf.mxu0 }
 0xbef   :  { %2706 = vst.msk [vmem:[#allocation5 + $0x18] sm:$0xff] %vm2702_vm6, %v2699_v23  ;;  %v2694_v25 = vadd.f32 %v2693_v24, %v2609_v58 }
 0xbf1   :  { %2705 = vst.msk [vmem:[#allocation5 + $0x10] sm:$0xff] %vm2702_vm6, %v2694_v25 }
 0xbf2   :  { %3347 = shalt.err (!%p3344_p4)
}
 0xbf3   :  { %s3361_s18 = smov 128   ;;  %s3362_s5 = smov 8  }
 0xbf4   :  { %2718 = dma.vmem_to_hbm [thread:$0]  %s2713_s11, 512, %s4887_s22, [#allocation6], %s3361_s18, %s3361_s18, %s3362_s5  }
 0xbf5   :  { %3356 = dma.done.wait [#allocation6], 512  }
 0xbf6   :  { %3357 = vsyncadd [#allocation6], 4294966784 }
 0xbf7   :  { %2722 = vsyncpa [#allocation6], 1 }

</bundles_post_ra>
